<compile_context>
chip_gen: v6e
topology: v6e:2x2x1
jax: 0.10.0
libtpu: 0.0.40
codegen_flags: <defaults>
</compile_context>

<pallas_src>
import math

import jax
import jax.numpy as jnp
from jax.experimental import pallas as pl
from jax.experimental.pallas import tpu as pltpu


# ------------------------------ Pallas kernel ------------------------------ #

def _cvae_fused_kernel(x_ref, eps_ref, wenc_ref, benc_ref, w1x_ref, w1z_ref,
                       b1_ref, w2_ref, b2_ref, out_ref, stats_ref):
    # x_ref:   (T, TD, E)  bf16   one batch element, one tile of variables
    # eps_ref: (TD, L)     f32
    # wenc:    (E, 2L) bf16, benc: (1, 2L) f32          (mu | logvar merged)
    # w1x:     (E, H)  bf16, w1z: (L, H) bf16, b1: (1, H) f32
    # w2:      (H, E)  bf16, b2: (1, E) f32
    # out_ref: (T, TD, E) bf16, stats_ref: (TD, 2L) f32 (mu | logvar)
    T = x_ref.shape[0]
    L = eps_ref.shape[-1]

    # ---- encoder: mean over time accumulated in f32 (x stays bf16 in VMEM) ----
    x_sum = x_ref[0].astype(jnp.float32)
    for t in range(1, T):
        x_sum = x_sum + x_ref[t].astype(jnp.float32)
    x_mean = x_sum * (1.0 / T)                                      # (TD, E) f32

    enc = jnp.dot(x_mean.astype(jnp.bfloat16), wenc_ref[...],
                  preferred_element_type=jnp.float32) + benc_ref[...]   # (TD, 2L)
    stats_ref[...] = enc                                            # mu | logvar slab
    mu = enc[:, :L]
    logvar = enc[:, L:]
    z = mu + jnp.exp(0.5 * logvar) * eps_ref[...]                   # reparam, f32

    # ---- decoder: z-path hoisted out of T, first-layer bias folded in --------
    zb = jnp.dot(z.astype(jnp.bfloat16), w1z_ref[...],
                 preferred_element_type=jnp.float32) + b1_ref[...]  # (TD, H) once

    # Per-timestep epilogue (T is static, so this unrolls at trace time). It never
    # materializes the (T*TD, H) hidden slab or the z broadcast: the only live
    # hidden tile is one (TD, H) f32 block, and no reshapes/relayouts are needed.
    # TODO(synk): for very large T switch this loop to lax.fori_loop(unroll=True).
    for t in range(T):
        h = jnp.dot(x_ref[t], w1x_ref[...], preferred_element_type=jnp.float32)
        h = jnp.maximum(h + zb, 0.0)                                # bias+z, ReLU (f32)
        y = jnp.dot(h.astype(jnp.bfloat16), w2_ref[...],
                    preferred_element_type=jnp.float32) + b2_ref[...]
        out_ref[t] = y.astype(out_ref.dtype)                        # bf16 store


# ------------------------------ kernel wrapper ------------------------------ #

def _tpu_defaults():
    """(max rows per step, scoped-VMEM limit) tuned per TPU generation."""
    kind = ""
    try:
        kind = jax.devices()[0].device_kind.lower()
    except Exception:
        pass
    if "v6" in kind:            # 128 MiB VMEM: larger tiles amortize per-step overhead
        return 4096, 64 * 1024 * 1024
    if "v5" in kind:            # 16 MiB scoped default is tight -> raise it
        return 1024, 48 * 1024 * 1024
    # v7x (64 MiB physical, 2 TCs) and unknown chips: small tiles, default scoped VMEM
    return 1024, 32 * 1024 * 1024


def _pick_var_tile(T, D, max_rows):
    """Tile TD along the variable axis and the (possibly padded) variable count."""
    if T * D <= max_rows or D <= 16:
        return D, D                       # single tile covers the full variable axis
    td = max(16, (max_rows // max(T, 1)) // 16 * 16)   # 16-aligned: bf16 sublanes,
    td = min(td, D)                                    # >=1 KiB strided DMA rows
    d_pad = -(-D // td) * td
    return td, d_pad


def cvae_forward(x, params, eps):
    """x: (B, T, D, E) f32 context; eps: (B, D, L) f32 (~ torch.randn_like)."""
    B, T, D, E = x.shape
    L = params["wmu"].shape[1]
    H = params["w1"].shape[1]

    max_rows, vmem_limit = _tpu_defaults()
    TD, D_pad = _pick_var_tile(T, D, max_rows)
    if D_pad != D:
        # Zero-pad the variable axis: keeps exp(0.5*logvar) finite on pad rows.
        x = jnp.pad(x, ((0, 0), (0, 0), (0, D_pad - D), (0, 0)))
        eps = jnp.pad(eps, ((0, 0), (0, D_pad - D), (0, 0)))

    x_bf = x.astype(jnp.bfloat16)         # x read from HBM once, as bf16

    # Merge encoder weights (one MXU push, lane-wider stats slab); split decoder w1.
    w_enc = jnp.concatenate([params["wmu"], params["wlv"]], axis=1).astype(jnp.bfloat16)
    b_enc = jnp.concatenate([params["bmu"], params["blv"]], axis=1)           # f32
    w1_x = params["w1"][:E, :].astype(jnp.bfloat16)                           # (E, H)
    w1_z = params["w1"][E:, :].astype(jnp.bfloat16)                           # (L, H)
    b1 = params["b1"]                                                         # f32
    w2 = params["w2"].astype(jnp.bfloat16)                                    # (H, E)
    b2 = params["b2"]                                                         # f32

    grid = (B, D_pad // TD)

    # Resident weights/biases are ~100 KiB total at E=64/H=256; default double
    # buffering is fine (single-buffering them is only material at larger H/E).
    full = lambda shape: pl.BlockSpec(shape, lambda b, d: (0,) * len(shape))

    out, stats = pl.pallas_call(
        _cvae_fused_kernel,
        grid=grid,
        out_shape=(
            jax.ShapeDtypeStruct((B, T, D_pad, E), jnp.bfloat16),   # bf16 recon
            jax.ShapeDtypeStruct((B, D_pad, 2 * L), jnp.float32),   # mu | logvar
        ),
        in_specs=[
            pl.BlockSpec((None, T, TD, E), lambda b, d: (b, 0, d, 0)),   # x (native layout)
            pl.BlockSpec((None, TD, L), lambda b, d: (b, d, 0)),         # eps
            full((E, 2 * L)),                                            # w_enc
            full((1, 2 * L)),                                            # b_enc
            full((E, H)),                                                # w1_x
            full((L, H)),                                                # w1_z
            full((1, H)),                                                # b1
            full((H, E)),                                                # w2
            full((1, E)),                                                # b2
        ],
        out_specs=(
            pl.BlockSpec((None, T, TD, E), lambda b, d: (b, 0, d, 0)),
            pl.BlockSpec((None, TD, 2 * L), lambda b, d: (b, d, 0)),
        ),
        compiler_params=pltpu.CompilerParams(
            dimension_semantics=("parallel", "parallel"),
            vmem_limit_bytes=vmem_limit),
    )(x_bf, eps, w_enc, b_enc, w1_x, w1_z, b1, w2, b2)

    out = out[:, :, :D, :]
    stats = stats[:, :D, :]
    return out, stats[..., :L], stats[..., L:]


# -------------------- plain-JAX frontend (embedding + attention) ------------ #

def _positional_encoding(embed_dim, max_len=5000):
    pos = jnp.arange(max_len, dtype=jnp.float32)[:, None]
    div = jnp.exp(jnp.arange(0, embed_dim, 2, dtype=jnp.float32)
                  * (-math.log(10000.0) / embed_dim))
    pe = jnp.zeros((max_len, embed_dim), jnp.float32)
    pe = pe.at[:, 0::2].set(jnp.sin(pos * div))
    pe = pe.at[:, 1::2].set(jnp.cos(pos * div))
    return pe


def variates_embedding(p, B, T, D):
    ve = p["var_emb"][:D]                       # (D, E)
    pe = p["pos_enc"][:T]                       # (T, E)
    E = ve.shape[-1]
    emb = ve[None, None, :, :] + pe[None, :, None, :]
    return jnp.broadcast_to(emb, (B, T, D, E))


def _mha(x, p, num_heads):
    """nn.MultiheadAttention (batch_first, self-attention, eval/no-dropout)."""
    B, S, E = x.shape
    hd = E // num_heads
    qkv = x @ p["w_in"] + p["b_in"]
    q, k, v = jnp.split(qkv, 3, axis=-1)
    heads = lambda t: t.reshape(B, S, num_heads, hd).transpose(0, 2, 1, 3)
    q, k, v = heads(q), heads(k), heads(v)
    att = jax.nn.softmax(jnp.einsum("bhqd,bhkd->bhqk", q, k) / math.sqrt(hd), axis=-1)
    o = jnp.einsum("bhqk,bhkd->bhqd", att, v).transpose(0, 2, 1, 3).reshape(B, S, E)
    return o @ p["w_out"] + p["b_out"]


def dual_branch_attention(p, x, num_heads=4):
    B, T, D, E = x.shape
    x_time = x.reshape(B, T, D * E)
    time_attn = _mha(x_time @ p["time_proj_w"] + p["time_proj_b"], p["time_mha"], num_heads)
    time_attn = jnp.broadcast_to(time_attn[:, :, None, :], (B, T, D, E))
    x_var = jnp.transpose(x, (0, 2, 1, 3)).reshape(B, D, T * E)
    var_attn = _mha(x_var @ p["var_proj_w"] + p["var_proj_b"], p["var_mha"], num_heads)
    var_attn = jnp.broadcast_to(var_attn[:, None, :, :], (B, T, D, E))
    return time_attn + var_attn


def model_forward(params, x, mask, eps, num_heads=4):
    """NonStructureVSFModel.forward (mask is unused by the torch forward too)."""
    B, T, D = x.shape
    x_embed = variates_embedding(params["emb"], B, T, D)
    context = dual_branch_attention(params["attn"], x_embed, num_heads=num_heads)
    recon, mu, logvar = cvae_forward(context, params["cvae"], eps)
    return recon, mu, logvar


# ------------------------------ pure-JAX reference -------------------------- #

def cvae_reference(x, params, eps):
    x_mean = jnp.mean(x, axis=1)
    mu = x_mean @ params["wmu"] + params["bmu"]
    logvar = x_mean @ params["wlv"] + params["blv"]
    z = mu + jnp.exp(0.5 * logvar) * eps
    B, T = x.shape[0], x.shape[1]
    z_exp = jnp.broadcast_to(z[:, None, :, :], (B, T) + z.shape[1:])
    combined = jnp.concatenate([x, z_exp], axis=-1)
    h = jnp.maximum(combined @ params["w1"] + params["b1"], 0.0)
    return h @ params["w2"] + params["b2"], mu, logvar


# ------------------------------ init ---------------------------------------- #

def _lin(kw, kb, fan_in, fan_out):
    bound = 1.0 / math.sqrt(fan_in)
    w = jax.random.uniform(kw, (fan_in, fan_out), jnp.float32, -bound, bound)
    b = jax.random.uniform(kb, (1, fan_out), jnp.float32, -bound, bound)
    return w, b


def init_cvae_params(key, embed_dim, latent_dim=32, hidden=256):
    ks = jax.random.split(key, 8)
    wmu, bmu = _lin(ks[0], ks[1], embed_dim, latent_dim)
    wlv, blv = _lin(ks[2], ks[3], embed_dim, latent_dim)
    w1, b1 = _lin(ks[4], ks[5], embed_dim + latent_dim, hidden)   # rows: [x(E) | z(L)]
    w2, b2 = _lin(ks[6], ks[7], hidden, embed_dim)
    return dict(wmu=wmu, bmu=bmu, wlv=wlv, blv=blv, w1=w1, b1=b1, w2=w2, b2=b2)


def init_model_params(key, num_vars, seq_len, embed_dim=64, latent_dim=32, hidden=256):
    kemb, kattn, kcvae = jax.random.split(key, 3)

    emb = dict(var_emb=jax.random.normal(kemb, (num_vars, embed_dim), jnp.float32),
               pos_enc=_positional_encoding(embed_dim))

    ks = jax.random.split(kattn, 8)

    def mha_init(k1, k2, E):
        b = 1.0 / math.sqrt(E)
        return dict(w_in=jax.random.uniform(k1, (E, 3 * E), jnp.float32, -b, b),
                    b_in=jnp.zeros((3 * E,), jnp.float32),
                    w_out=jax.random.uniform(k2, (E, E), jnp.float32, -b, b),
                    b_out=jnp.zeros((E,), jnp.float32))

    tp_w, tp_b = _lin(ks[0], ks[1], num_vars * embed_dim, embed_dim)
    vp_w, vp_b = _lin(ks[2], ks[3], seq_len * embed_dim, embed_dim)
    attn = dict(time_proj_w=tp_w, time_proj_b=tp_b[0], time_mha=mha_init(ks[4], ks[5], embed_dim),
                var_proj_w=vp_w, var_proj_b=vp_b[0], var_mha=mha_init(ks[6], ks[7], embed_dim))

    return dict(emb=emb, attn=attn, cvae=init_cvae_params(kcvae, embed_dim, latent_dim, hidden))


# ------------------------------ main ----------------------------------------- #

if __name__ == "__main__":
    # num_vars=8, seq_len=8, embed_dim=64 (module default), latent_dim=32, hidden=256
    B, T, D, E, L, H = 2, 8, 8, 64, 32, 256

    key = jax.random.PRNGKey(0)
    kx, keps, kp = jax.random.split(key, 3)

    x_raw = jax.random.normal(kx, (B, T, D), jnp.float32)   # raw multivariate series
    mask = jnp.zeros((B, T, D), jnp.float32)                # unused by forward (loss only)
    eps = jax.random.normal(keps, (B, D, L), jnp.float32)   # replaces torch.randn_like
    params = init_model_params(kp, num_vars=D, seq_len=T, embed_dim=E,
                               latent_dim=L, hidden=H)

    recon, mu, logvar = jax.jit(model_forward)(params, x_raw, mask, eps)
    jax.block_until_ready((recon, mu, logvar))

    assert recon.shape == (B, T, D, E)
    assert mu.shape == (B, D, L) and logvar.shape == (B, D, L)

    # Correctness of the fused Pallas CVAE stage vs a pure-JAX f32 reference
    # (bf16 MXU operands + bf16 recon storage -> loose-but-tight tolerance).
    ctx = dual_branch_attention(params["attn"], variates_embedding(params["emb"], B, T, D))
    ref_out, ref_mu, ref_lv = cvae_reference(ctx, params["cvae"], eps)
    err = max(float(jnp.max(jnp.abs(recon.astype(jnp.float32) - ref_out))),
              float(jnp.max(jnp.abs(mu - ref_mu))),
              float(jnp.max(jnp.abs(logvar - ref_lv))))
    assert err < 5e-2, f"max abs error vs reference: {err}"

    print("KERNEL_OK")
</pallas_src>

<mosaic_0001>
module attributes {stable_mosaic.version = 11 : i64} {
  func.func @_cvae_fused_kernel(%arg0: i32, %arg1: i32, %arg2: memref<1x8x8x64xbf16, #tpu.memory_space<vmem>>, %arg3: memref<1x8x32xf32, #tpu.memory_space<vmem>>, %arg4: memref<64x64xbf16, #tpu.memory_space<vmem>>, %arg5: memref<1x64xf32, #tpu.memory_space<vmem>>, %arg6: memref<64x256xbf16, #tpu.memory_space<vmem>>, %arg7: memref<32x256xbf16, #tpu.memory_space<vmem>>, %arg8: memref<1x256xf32, #tpu.memory_space<vmem>>, %arg9: memref<256x64xbf16, #tpu.memory_space<vmem>>, %arg10: memref<1x64xf32, #tpu.memory_space<vmem>>, %arg11: memref<1x8x8x64xbf16, #tpu.memory_space<vmem>>, %arg12: memref<1x8x64xf32, #tpu.memory_space<vmem>>) attributes {dimension_semantics = [#tpu.dimension_semantics<parallel>, #tpu.dimension_semantics<parallel>], iteration_bounds = array<i64: 2, 1>, scalar_prefetch = 0 : i64, scratch_operands = 0 : i64, tpu.core_type = #tpu.core_type<tc>, window_params = [{transform_indices = @transform_0, window_bounds = array<i64: 1, 8, 8, 64>}, {transform_indices = @transform_1, window_bounds = array<i64: 1, 8, 32>}, {pipeline_mode = #tpu.pipeline_mode<synchronous>, transform_indices = @transform_2, window_bounds = array<i64: 64, 64>}, {pipeline_mode = #tpu.pipeline_mode<synchronous>, transform_indices = @transform_3, window_bounds = array<i64: 1, 64>}, {pipeline_mode = #tpu.pipeline_mode<synchronous>, transform_indices = @transform_4, window_bounds = array<i64: 64, 256>}, {pipeline_mode = #tpu.pipeline_mode<synchronous>, transform_indices = @transform_5, window_bounds = array<i64: 32, 256>}, {pipeline_mode = #tpu.pipeline_mode<synchronous>, transform_indices = @transform_6, window_bounds = array<i64: 1, 256>}, {pipeline_mode = #tpu.pipeline_mode<synchronous>, transform_indices = @transform_7, window_bounds = array<i64: 256, 64>}, {pipeline_mode = #tpu.pipeline_mode<synchronous>, transform_indices = @transform_8, window_bounds = array<i64: 1, 64>}, {transform_indices = @transform_9, window_bounds = array<i64: 1, 8, 8, 64>}, {transform_indices = @transform_10, window_bounds = array<i64: 1, 8, 64>}]} {
    %c0 = arith.constant 0 : index
    %c0_0 = arith.constant 0 : index
    %c0_1 = arith.constant 0 : index
    %c0_2 = arith.constant 0 : index
    %0 = vector.load %arg2[%c0, %c0_0, %c0_1, %c0_2] : memref<1x8x8x64xbf16, #tpu.memory_space<vmem>>, vector<1x1x8x64xbf16>
    %1 = vector.shape_cast %0 : vector<1x1x8x64xbf16> to vector<8x64xbf16>
    %2 = arith.extf %1 : vector<8x64xbf16> to vector<8x64xf32>
    %c0_3 = arith.constant 0 : index
    %c1 = arith.constant 1 : index
    %c0_4 = arith.constant 0 : index
    %c0_5 = arith.constant 0 : index
    %3 = vector.load %arg2[%c0_3, %c1, %c0_4, %c0_5] : memref<1x8x8x64xbf16, #tpu.memory_space<vmem>>, vector<1x1x8x64xbf16>
    %4 = vector.shape_cast %3 : vector<1x1x8x64xbf16> to vector<8x64xbf16>
    %5 = arith.extf %4 : vector<8x64xbf16> to vector<8x64xf32>
    %6 = arith.addf %2, %5 : vector<8x64xf32>
    %c0_6 = arith.constant 0 : index
    %c2 = arith.constant 2 : index
    %c0_7 = arith.constant 0 : index
    %c0_8 = arith.constant 0 : index
    %7 = vector.load %arg2[%c0_6, %c2, %c0_7, %c0_8] : memref<1x8x8x64xbf16, #tpu.memory_space<vmem>>, vector<1x1x8x64xbf16>
    %8 = vector.shape_cast %7 : vector<1x1x8x64xbf16> to vector<8x64xbf16>
    %9 = arith.extf %8 : vector<8x64xbf16> to vector<8x64xf32>
    %10 = arith.addf %6, %9 : vector<8x64xf32>
    %c0_9 = arith.constant 0 : index
    %c3 = arith.constant 3 : index
    %c0_10 = arith.constant 0 : index
    %c0_11 = arith.constant 0 : index
    %11 = vector.load %arg2[%c0_9, %c3, %c0_10, %c0_11] : memref<1x8x8x64xbf16, #tpu.memory_space<vmem>>, vector<1x1x8x64xbf16>
    %12 = vector.shape_cast %11 : vector<1x1x8x64xbf16> to vector<8x64xbf16>
    %13 = arith.extf %12 : vector<8x64xbf16> to vector<8x64xf32>
    %14 = arith.addf %10, %13 : vector<8x64xf32>
    %c0_12 = arith.constant 0 : index
    %c4 = arith.constant 4 : index
    %c0_13 = arith.constant 0 : index
    %c0_14 = arith.constant 0 : index
    %15 = vector.load %arg2[%c0_12, %c4, %c0_13, %c0_14] : memref<1x8x8x64xbf16, #tpu.memory_space<vmem>>, vector<1x1x8x64xbf16>
    %16 = vector.shape_cast %15 : vector<1x1x8x64xbf16> to vector<8x64xbf16>
    %17 = arith.extf %16 : vector<8x64xbf16> to vector<8x64xf32>
    %18 = arith.addf %14, %17 : vector<8x64xf32>
    %c0_15 = arith.constant 0 : index
    %c5 = arith.constant 5 : index
    %c0_16 = arith.constant 0 : index
    %c0_17 = arith.constant 0 : index
    %19 = vector.load %arg2[%c0_15, %c5, %c0_16, %c0_17] : memref<1x8x8x64xbf16, #tpu.memory_space<vmem>>, vector<1x1x8x64xbf16>
    %20 = vector.shape_cast %19 : vector<1x1x8x64xbf16> to vector<8x64xbf16>
    %21 = arith.extf %20 : vector<8x64xbf16> to vector<8x64xf32>
    %22 = arith.addf %18, %21 : vector<8x64xf32>
    %c0_18 = arith.constant 0 : index
    %c6 = arith.constant 6 : index
    %c0_19 = arith.constant 0 : index
    %c0_20 = arith.constant 0 : index
    %23 = vector.load %arg2[%c0_18, %c6, %c0_19, %c0_20] : memref<1x8x8x64xbf16, #tpu.memory_space<vmem>>, vector<1x1x8x64xbf16>
    %24 = vector.shape_cast %23 : vector<1x1x8x64xbf16> to vector<8x64xbf16>
    %25 = arith.extf %24 : vector<8x64xbf16> to vector<8x64xf32>
    %26 = arith.addf %22, %25 : vector<8x64xf32>
    %c0_21 = arith.constant 0 : index
    %c7 = arith.constant 7 : index
    %c0_22 = arith.constant 0 : index
    %c0_23 = arith.constant 0 : index
    %27 = vector.load %arg2[%c0_21, %c7, %c0_22, %c0_23] : memref<1x8x8x64xbf16, #tpu.memory_space<vmem>>, vector<1x1x8x64xbf16>
    %28 = vector.shape_cast %27 : vector<1x1x8x64xbf16> to vector<8x64xbf16>
    %29 = arith.extf %28 : vector<8x64xbf16> to vector<8x64xf32>
    %30 = arith.addf %26, %29 : vector<8x64xf32>
    %cst = arith.constant 1.250000e-01 : f32
    %31 = vector.broadcast %cst : f32 to vector<8x64xf32>
    %32 = arith.mulf %30, %31 : vector<8x64xf32>
    %33 = arith.truncf %32 : vector<8x64xf32> to vector<8x64xbf16>
    %c0_24 = arith.constant 0 : index
    %c0_25 = arith.constant 0 : index
    %34 = vector.load %arg4[%c0_24, %c0_25] : memref<64x64xbf16, #tpu.memory_space<vmem>>, vector<64x64xbf16>
    %cst_26 = arith.constant dense<0.000000e+00> : vector<8x64xf32>
    %35 = tpu.matmul %33, %34, %cst_26 {dimension_numbers = #tpu.dot_dimension_numbers<[1], [0], [0], [1], [0, 0, 1, 1], [], []>} : vector<8x64xbf16>, vector<64x64xbf16>, vector<8x64xf32> -> vector<8x64xf32>
    %c0_27 = arith.constant 0 : index
    %c0_28 = arith.constant 0 : index
    %36 = vector.load %arg5[%c0_27, %c0_28] : memref<1x64xf32, #tpu.memory_space<vmem>>, vector<1x64xf32>
    %37 = vector.broadcast %36 : vector<1x64xf32> to vector<8x64xf32>
    %38 = arith.addf %35, %37 : vector<8x64xf32>
    %c0_29 = arith.constant 0 : index
    %c0_30 = arith.constant 0 : index
    %c0_31 = arith.constant 0 : index
    %39 = vector.load %arg12[%c0_29, %c0_30, %c0_31] : memref<1x8x64xf32, #tpu.memory_space<vmem>>, vector<1x8x64xf32>
    %40 = vector.shape_cast %39 : vector<1x8x64xf32> to vector<8x64xf32>
    %41 = vector.shape_cast %38 : vector<8x64xf32> to vector<1x8x64xf32>
    tpu.vector_store %arg12[%c0_29, %c0_30, %c0_31], %41 {strides = array<i32>} : memref<1x8x64xf32, #tpu.memory_space<vmem>>, vector<1x8x64xf32>,
    %42 = vector.extract_strided_slice %38 {offsets = [0, 0], sizes = [8, 32], strides = [1, 1]} : vector<8x64xf32> to vector<8x32xf32>
    %43 = vector.extract_strided_slice %38 {offsets = [0, 32], sizes = [8, 32], strides = [1, 1]} : vector<8x64xf32> to vector<8x32xf32>
    %cst_32 = arith.constant 5.000000e-01 : f32
    %44 = vector.broadcast %cst_32 : f32 to vector<8x32xf32>
    %45 = arith.mulf %44, %43 : vector<8x32xf32>
    %46 = math.exp %45 : vector<8x32xf32>
    %c0_33 = arith.constant 0 : index
    %c0_34 = arith.constant 0 : index
    %c0_35 = arith.constant 0 : index
    %47 = vector.load %arg3[%c0_33, %c0_34, %c0_35] : memref<1x8x32xf32, #tpu.memory_space<vmem>>, vector<1x8x32xf32>
    %48 = vector.shape_cast %47 : vector<1x8x32xf32> to vector<8x32xf32>
    %49 = arith.mulf %46, %48 : vector<8x32xf32>
    %50 = arith.addf %42, %49 : vector<8x32xf32>
    %51 = arith.truncf %50 : vector<8x32xf32> to vector<8x32xbf16>
    %c0_36 = arith.constant 0 : index
    %c0_37 = arith.constant 0 : index
    %52 = vector.load %arg7[%c0_36, %c0_37] : memref<32x256xbf16, #tpu.memory_space<vmem>>, vector<32x256xbf16>
    %cst_38 = arith.constant dense<0.000000e+00> : vector<8x256xf32>
    %53 = tpu.matmul %51, %52, %cst_38 {dimension_numbers = #tpu.dot_dimension_numbers<[1], [0], [0], [1], [0, 0, 1, 1], [], []>} : vector<8x32xbf16>, vector<32x256xbf16>, vector<8x256xf32> -> vector<8x256xf32>
    %c0_39 = arith.constant 0 : index
    %c0_40 = arith.constant 0 : index
    %54 = vector.load %arg8[%c0_39, %c0_40] : memref<1x256xf32, #tpu.memory_space<vmem>>, vector<1x256xf32>
    %55 = vector.broadcast %54 : vector<1x256xf32> to vector<8x256xf32>
    %56 = arith.addf %53, %55 : vector<8x256xf32>
    %c0_41 = arith.constant 0 : index
    %c0_42 = arith.constant 0 : index
    %c0_43 = arith.constant 0 : index
    %c0_44 = arith.constant 0 : index
    %57 = vector.load %arg2[%c0_41, %c0_42, %c0_43, %c0_44] : memref<1x8x8x64xbf16, #tpu.memory_space<vmem>>, vector<1x1x8x64xbf16>
    %58 = vector.shape_cast %57 : vector<1x1x8x64xbf16> to vector<8x64xbf16>
    %c0_45 = arith.constant 0 : index
    %c0_46 = arith.constant 0 : index
    %59 = vector.load %arg6[%c0_45, %c0_46] : memref<64x256xbf16, #tpu.memory_space<vmem>>, vector<64x256xbf16>
    %cst_47 = arith.constant dense<0.000000e+00> : vector<8x256xf32>
    %60 = tpu.matmul %58, %59, %cst_47 {dimension_numbers = #tpu.dot_dimension_numbers<[1], [0], [0], [1], [0, 0, 1, 1], [], []>} : vector<8x64xbf16>, vector<64x256xbf16>, vector<8x256xf32> -> vector<8x256xf32>
    %61 = arith.addf %60, %56 : vector<8x256xf32>
    %cst_48 = arith.constant 0.000000e+00 : f32
    %62 = vector.broadcast %cst_48 : f32 to vector<8x256xf32>
    %63 = arith.maximumf %61, %62 : vector<8x256xf32>
    %64 = arith.truncf %63 : vector<8x256xf32> to vector<8x256xbf16>
    %c0_49 = arith.constant 0 : index
    %c0_50 = arith.constant 0 : index
    %65 = vector.load %arg9[%c0_49, %c0_50] : memref<256x64xbf16, #tpu.memory_space<vmem>>, vector<256x64xbf16>
    %cst_51 = arith.constant dense<0.000000e+00> : vector<8x64xf32>
    %66 = tpu.matmul %64, %65, %cst_51 {dimension_numbers = #tpu.dot_dimension_numbers<[1], [0], [0], [1], [0, 0, 1, 1], [], []>} : vector<8x256xbf16>, vector<256x64xbf16>, vector<8x64xf32> -> vector<8x64xf32>
    %c0_52 = arith.constant 0 : index
    %c0_53 = arith.constant 0 : index
    %67 = vector.load %arg10[%c0_52, %c0_53] : memref<1x64xf32, #tpu.memory_space<vmem>>, vector<1x64xf32>
    %68 = vector.broadcast %67 : vector<1x64xf32> to vector<8x64xf32>
    %69 = arith.addf %66, %68 : vector<8x64xf32>
    %70 = arith.truncf %69 : vector<8x64xf32> to vector<8x64xbf16>
    %c0_54 = arith.constant 0 : index
    %c0_55 = arith.constant 0 : index
    %c0_56 = arith.constant 0 : index
    %c0_57 = arith.constant 0 : index
    %71 = vector.load %arg11[%c0_54, %c0_55, %c0_56, %c0_57] : memref<1x8x8x64xbf16, #tpu.memory_space<vmem>>, vector<1x1x8x64xbf16>
    %72 = vector.shape_cast %71 : vector<1x1x8x64xbf16> to vector<8x64xbf16>
    %73 = vector.shape_cast %70 : vector<8x64xbf16> to vector<1x1x8x64xbf16>
    tpu.vector_store %arg11[%c0_54, %c0_55, %c0_56, %c0_57], %73 {strides = array<i32>} : memref<1x8x8x64xbf16, #tpu.memory_space<vmem>>, vector<1x1x8x64xbf16>,
    %c0_58 = arith.constant 0 : index
    %c1_59 = arith.constant 1 : index
    %c0_60 = arith.constant 0 : index
    %c0_61 = arith.constant 0 : index
    %74 = vector.load %arg2[%c0_58, %c1_59, %c0_60, %c0_61] : memref<1x8x8x64xbf16, #tpu.memory_space<vmem>>, vector<1x1x8x64xbf16>
    %75 = vector.shape_cast %74 : vector<1x1x8x64xbf16> to vector<8x64xbf16>
    %c0_62 = arith.constant 0 : index
    %c0_63 = arith.constant 0 : index
    %76 = vector.load %arg6[%c0_62, %c0_63] : memref<64x256xbf16, #tpu.memory_space<vmem>>, vector<64x256xbf16>
    %cst_64 = arith.constant dense<0.000000e+00> : vector<8x256xf32>
    %77 = tpu.matmul %75, %76, %cst_64 {dimension_numbers = #tpu.dot_dimension_numbers<[1], [0], [0], [1], [0, 0, 1, 1], [], []>} : vector<8x64xbf16>, vector<64x256xbf16>, vector<8x256xf32> -> vector<8x256xf32>
    %78 = arith.addf %77, %56 : vector<8x256xf32>
    %cst_65 = arith.constant 0.000000e+00 : f32
    %79 = vector.broadcast %cst_65 : f32 to vector<8x256xf32>
    %80 = arith.maximumf %78, %79 : vector<8x256xf32>
    %81 = arith.truncf %80 : vector<8x256xf32> to vector<8x256xbf16>
    %c0_66 = arith.constant 0 : index
    %c0_67 = arith.constant 0 : index
    %82 = vector.load %arg9[%c0_66, %c0_67] : memref<256x64xbf16, #tpu.memory_space<vmem>>, vector<256x64xbf16>
    %cst_68 = arith.constant dense<0.000000e+00> : vector<8x64xf32>
    %83 = tpu.matmul %81, %82, %cst_68 {dimension_numbers = #tpu.dot_dimension_numbers<[1], [0], [0], [1], [0, 0, 1, 1], [], []>} : vector<8x256xbf16>, vector<256x64xbf16>, vector<8x64xf32> -> vector<8x64xf32>
    %c0_69 = arith.constant 0 : index
    %c0_70 = arith.constant 0 : index
    %84 = vector.load %arg10[%c0_69, %c0_70] : memref<1x64xf32, #tpu.memory_space<vmem>>, vector<1x64xf32>
    %85 = vector.broadcast %84 : vector<1x64xf32> to vector<8x64xf32>
    %86 = arith.addf %83, %85 : vector<8x64xf32>
    %87 = arith.truncf %86 : vector<8x64xf32> to vector<8x64xbf16>
    %c0_71 = arith.constant 0 : index
    %c1_72 = arith.constant 1 : index
    %c0_73 = arith.constant 0 : index
    %c0_74 = arith.constant 0 : index
    %88 = vector.load %arg11[%c0_71, %c1_72, %c0_73, %c0_74] : memref<1x8x8x64xbf16, #tpu.memory_space<vmem>>, vector<1x1x8x64xbf16>
    %89 = vector.shape_cast %88 : vector<1x1x8x64xbf16> to vector<8x64xbf16>
    %90 = vector.shape_cast %87 : vector<8x64xbf16> to vector<1x1x8x64xbf16>
    tpu.vector_store %arg11[%c0_71, %c1_72, %c0_73, %c0_74], %90 {strides = array<i32>} : memref<1x8x8x64xbf16, #tpu.memory_space<vmem>>, vector<1x1x8x64xbf16>,
    %c0_75 = arith.constant 0 : index
    %c2_76 = arith.constant 2 : index
    %c0_77 = arith.constant 0 : index
    %c0_78 = arith.constant 0 : index
    %91 = vector.load %arg2[%c0_75, %c2_76, %c0_77, %c0_78] : memref<1x8x8x64xbf16, #tpu.memory_space<vmem>>, vector<1x1x8x64xbf16>
    %92 = vector.shape_cast %91 : vector<1x1x8x64xbf16> to vector<8x64xbf16>
    %c0_79 = arith.constant 0 : index
    %c0_80 = arith.constant 0 : index
    %93 = vector.load %arg6[%c0_79, %c0_80] : memref<64x256xbf16, #tpu.memory_space<vmem>>, vector<64x256xbf16>
    %cst_81 = arith.constant dense<0.000000e+00> : vector<8x256xf32>
    %94 = tpu.matmul %92, %93, %cst_81 {dimension_numbers = #tpu.dot_dimension_numbers<[1], [0], [0], [1], [0, 0, 1, 1], [], []>} : vector<8x64xbf16>, vector<64x256xbf16>, vector<8x256xf32> -> vector<8x256xf32>
    %95 = arith.addf %94, %56 : vector<8x256xf32>
    %cst_82 = arith.constant 0.000000e+00 : f32
    %96 = vector.broadcast %cst_82 : f32 to vector<8x256xf32>
    %97 = arith.maximumf %95, %96 : vector<8x256xf32>
    %98 = arith.truncf %97 : vector<8x256xf32> to vector<8x256xbf16>
    %c0_83 = arith.constant 0 : index
    %c0_84 = arith.constant 0 : index
    %99 = vector.load %arg9[%c0_83, %c0_84] : memref<256x64xbf16, #tpu.memory_space<vmem>>, vector<256x64xbf16>
    %cst_85 = arith.constant dense<0.000000e+00> : vector<8x64xf32>
    %100 = tpu.matmul %98, %99, %cst_85 {dimension_numbers = #tpu.dot_dimension_numbers<[1], [0], [0], [1], [0, 0, 1, 1], [], []>} : vector<8x256xbf16>, vector<256x64xbf16>, vector<8x64xf32> -> vector<8x64xf32>
    %c0_86 = arith.constant 0 : index
    %c0_87 = arith.constant 0 : index
    %101 = vector.load %arg10[%c0_86, %c0_87] : memref<1x64xf32, #tpu.memory_space<vmem>>, vector<1x64xf32>
    %102 = vector.broadcast %101 : vector<1x64xf32> to vector<8x64xf32>
    %103 = arith.addf %100, %102 : vector<8x64xf32>
    %104 = arith.truncf %103 : vector<8x64xf32> to vector<8x64xbf16>
    %c0_88 = arith.constant 0 : index
    %c2_89 = arith.constant 2 : index
    %c0_90 = arith.constant 0 : index
    %c0_91 = arith.constant 0 : index
    %105 = vector.load %arg11[%c0_88, %c2_89, %c0_90, %c0_91] : memref<1x8x8x64xbf16, #tpu.memory_space<vmem>>, vector<1x1x8x64xbf16>
    %106 = vector.shape_cast %105 : vector<1x1x8x64xbf16> to vector<8x64xbf16>
    %107 = vector.shape_cast %104 : vector<8x64xbf16> to vector<1x1x8x64xbf16>
    tpu.vector_store %arg11[%c0_88, %c2_89, %c0_90, %c0_91], %107 {strides = array<i32>} : memref<1x8x8x64xbf16, #tpu.memory_space<vmem>>, vector<1x1x8x64xbf16>,
    %c0_92 = arith.constant 0 : index
    %c3_93 = arith.constant 3 : index
    %c0_94 = arith.constant 0 : index
    %c0_95 = arith.constant 0 : index
    %108 = vector.load %arg2[%c0_92, %c3_93, %c0_94, %c0_95] : memref<1x8x8x64xbf16, #tpu.memory_space<vmem>>, vector<1x1x8x64xbf16>
    %109 = vector.shape_cast %108 : vector<1x1x8x64xbf16> to vector<8x64xbf16>
    %c0_96 = arith.constant 0 : index
    %c0_97 = arith.constant 0 : index
    %110 = vector.load %arg6[%c0_96, %c0_97] : memref<64x256xbf16, #tpu.memory_space<vmem>>, vector<64x256xbf16>
    %cst_98 = arith.constant dense<0.000000e+00> : vector<8x256xf32>
    %111 = tpu.matmul %109, %110, %cst_98 {dimension_numbers = #tpu.dot_dimension_numbers<[1], [0], [0], [1], [0, 0, 1, 1], [], []>} : vector<8x64xbf16>, vector<64x256xbf16>, vector<8x256xf32> -> vector<8x256xf32>
    %112 = arith.addf %111, %56 : vector<8x256xf32>
    %cst_99 = arith.constant 0.000000e+00 : f32
    %113 = vector.broadcast %cst_99 : f32 to vector<8x256xf32>
    %114 = arith.maximumf %112, %113 : vector<8x256xf32>
    %115 = arith.truncf %114 : vector<8x256xf32> to vector<8x256xbf16>
    %c0_100 = arith.constant 0 : index
    %c0_101 = arith.constant 0 : index
    %116 = vector.load %arg9[%c0_100, %c0_101] : memref<256x64xbf16, #tpu.memory_space<vmem>>, vector<256x64xbf16>
    %cst_102 = arith.constant dense<0.000000e+00> : vector<8x64xf32>
    %117 = tpu.matmul %115, %116, %cst_102 {dimension_numbers = #tpu.dot_dimension_numbers<[1], [0], [0], [1], [0, 0, 1, 1], [], []>} : vector<8x256xbf16>, vector<256x64xbf16>, vector<8x64xf32> -> vector<8x64xf32>
    %c0_103 = arith.constant 0 : index
    %c0_104 = arith.constant 0 : index
    %118 = vector.load %arg10[%c0_103, %c0_104] : memref<1x64xf32, #tpu.memory_space<vmem>>, vector<1x64xf32>
    %119 = vector.broadcast %118 : vector<1x64xf32> to vector<8x64xf32>
    %120 = arith.addf %117, %119 : vector<8x64xf32>
    %121 = arith.truncf %120 : vector<8x64xf32> to vector<8x64xbf16>
    %c0_105 = arith.constant 0 : index
    %c3_106 = arith.constant 3 : index
    %c0_107 = arith.constant 0 : index
    %c0_108 = arith.constant 0 : index
    %122 = vector.load %arg11[%c0_105, %c3_106, %c0_107, %c0_108] : memref<1x8x8x64xbf16, #tpu.memory_space<vmem>>, vector<1x1x8x64xbf16>
    %123 = vector.shape_cast %122 : vector<1x1x8x64xbf16> to vector<8x64xbf16>
    %124 = vector.shape_cast %121 : vector<8x64xbf16> to vector<1x1x8x64xbf16>
    tpu.vector_store %arg11[%c0_105, %c3_106, %c0_107, %c0_108], %124 {strides = array<i32>} : memref<1x8x8x64xbf16, #tpu.memory_space<vmem>>, vector<1x1x8x64xbf16>,
    %c0_109 = arith.constant 0 : index
    %c4_110 = arith.constant 4 : index
    %c0_111 = arith.constant 0 : index
    %c0_112 = arith.constant 0 : index
    %125 = vector.load %arg2[%c0_109, %c4_110, %c0_111, %c0_112] : memref<1x8x8x64xbf16, #tpu.memory_space<vmem>>, vector<1x1x8x64xbf16>
    %126 = vector.shape_cast %125 : vector<1x1x8x64xbf16> to vector<8x64xbf16>
    %c0_113 = arith.constant 0 : index
    %c0_114 = arith.constant 0 : index
    %127 = vector.load %arg6[%c0_113, %c0_114] : memref<64x256xbf16, #tpu.memory_space<vmem>>, vector<64x256xbf16>
    %cst_115 = arith.constant dense<0.000000e+00> : vector<8x256xf32>
    %128 = tpu.matmul %126, %127, %cst_115 {dimension_numbers = #tpu.dot_dimension_numbers<[1], [0], [0], [1], [0, 0, 1, 1], [], []>} : vector<8x64xbf16>, vector<64x256xbf16>, vector<8x256xf32> -> vector<8x256xf32>
    %129 = arith.addf %128, %56 : vector<8x256xf32>
    %cst_116 = arith.constant 0.000000e+00 : f32
    %130 = vector.broadcast %cst_116 : f32 to vector<8x256xf32>
    %131 = arith.maximumf %129, %130 : vector<8x256xf32>
    %132 = arith.truncf %131 : vector<8x256xf32> to vector<8x256xbf16>
    %c0_117 = arith.constant 0 : index
    %c0_118 = arith.constant 0 : index
    %133 = vector.load %arg9[%c0_117, %c0_118] : memref<256x64xbf16, #tpu.memory_space<vmem>>, vector<256x64xbf16>
    %cst_119 = arith.constant dense<0.000000e+00> : vector<8x64xf32>
    %134 = tpu.matmul %132, %133, %cst_119 {dimension_numbers = #tpu.dot_dimension_numbers<[1], [0], [0], [1], [0, 0, 1, 1], [], []>} : vector<8x256xbf16>, vector<256x64xbf16>, vector<8x64xf32> -> vector<8x64xf32>
    %c0_120 = arith.constant 0 : index
    %c0_121 = arith.constant 0 : index
    %135 = vector.load %arg10[%c0_120, %c0_121] : memref<1x64xf32, #tpu.memory_space<vmem>>, vector<1x64xf32>
    %136 = vector.broadcast %135 : vector<1x64xf32> to vector<8x64xf32>
    %137 = arith.addf %134, %136 : vector<8x64xf32>
    %138 = arith.truncf %137 : vector<8x64xf32> to vector<8x64xbf16>
    %c0_122 = arith.constant 0 : index
    %c4_123 = arith.constant 4 : index
    %c0_124 = arith.constant 0 : index
    %c0_125 = arith.constant 0 : index
    %139 = vector.load %arg11[%c0_122, %c4_123, %c0_124, %c0_125] : memref<1x8x8x64xbf16, #tpu.memory_space<vmem>>, vector<1x1x8x64xbf16>
    %140 = vector.shape_cast %139 : vector<1x1x8x64xbf16> to vector<8x64xbf16>
    %141 = vector.shape_cast %138 : vector<8x64xbf16> to vector<1x1x8x64xbf16>
    tpu.vector_store %arg11[%c0_122, %c4_123, %c0_124, %c0_125], %141 {strides = array<i32>} : memref<1x8x8x64xbf16, #tpu.memory_space<vmem>>, vector<1x1x8x64xbf16>,
    %c0_126 = arith.constant 0 : index
    %c5_127 = arith.constant 5 : index
    %c0_128 = arith.constant 0 : index
    %c0_129 = arith.constant 0 : index
    %142 = vector.load %arg2[%c0_126, %c5_127, %c0_128, %c0_129] : memref<1x8x8x64xbf16, #tpu.memory_space<vmem>>, vector<1x1x8x64xbf16>
    %143 = vector.shape_cast %142 : vector<1x1x8x64xbf16> to vector<8x64xbf16>
    %c0_130 = arith.constant 0 : index
    %c0_131 = arith.constant 0 : index
    %144 = vector.load %arg6[%c0_130, %c0_131] : memref<64x256xbf16, #tpu.memory_space<vmem>>, vector<64x256xbf16>
    %cst_132 = arith.constant dense<0.000000e+00> : vector<8x256xf32>
    %145 = tpu.matmul %143, %144, %cst_132 {dimension_numbers = #tpu.dot_dimension_numbers<[1], [0], [0], [1], [0, 0, 1, 1], [], []>} : vector<8x64xbf16>, vector<64x256xbf16>, vector<8x256xf32> -> vector<8x256xf32>
    %146 = arith.addf %145, %56 : vector<8x256xf32>
    %cst_133 = arith.constant 0.000000e+00 : f32
    %147 = vector.broadcast %cst_133 : f32 to vector<8x256xf32>
    %148 = arith.maximumf %146, %147 : vector<8x256xf32>
    %149 = arith.truncf %148 : vector<8x256xf32> to vector<8x256xbf16>
    %c0_134 = arith.constant 0 : index
    %c0_135 = arith.constant 0 : index
    %150 = vector.load %arg9[%c0_134, %c0_135] : memref<256x64xbf16, #tpu.memory_space<vmem>>, vector<256x64xbf16>
    %cst_136 = arith.constant dense<0.000000e+00> : vector<8x64xf32>
    %151 = tpu.matmul %149, %150, %cst_136 {dimension_numbers = #tpu.dot_dimension_numbers<[1], [0], [0], [1], [0, 0, 1, 1], [], []>} : vector<8x256xbf16>, vector<256x64xbf16>, vector<8x64xf32> -> vector<8x64xf32>
    %c0_137 = arith.constant 0 : index
    %c0_138 = arith.constant 0 : index
    %152 = vector.load %arg10[%c0_137, %c0_138] : memref<1x64xf32, #tpu.memory_space<vmem>>, vector<1x64xf32>
    %153 = vector.broadcast %152 : vector<1x64xf32> to vector<8x64xf32>
    %154 = arith.addf %151, %153 : vector<8x64xf32>
    %155 = arith.truncf %154 : vector<8x64xf32> to vector<8x64xbf16>
    %c0_139 = arith.constant 0 : index
    %c5_140 = arith.constant 5 : index
    %c0_141 = arith.constant 0 : index
    %c0_142 = arith.constant 0 : index
    %156 = vector.load %arg11[%c0_139, %c5_140, %c0_141, %c0_142] : memref<1x8x8x64xbf16, #tpu.memory_space<vmem>>, vector<1x1x8x64xbf16>
    %157 = vector.shape_cast %156 : vector<1x1x8x64xbf16> to vector<8x64xbf16>
    %158 = vector.shape_cast %155 : vector<8x64xbf16> to vector<1x1x8x64xbf16>
    tpu.vector_store %arg11[%c0_139, %c5_140, %c0_141, %c0_142], %158 {strides = array<i32>} : memref<1x8x8x64xbf16, #tpu.memory_space<vmem>>, vector<1x1x8x64xbf16>,
    %c0_143 = arith.constant 0 : index
    %c6_144 = arith.constant 6 : index
    %c0_145 = arith.constant 0 : index
    %c0_146 = arith.constant 0 : index
    %159 = vector.load %arg2[%c0_143, %c6_144, %c0_145, %c0_146] : memref<1x8x8x64xbf16, #tpu.memory_space<vmem>>, vector<1x1x8x64xbf16>
    %160 = vector.shape_cast %159 : vector<1x1x8x64xbf16> to vector<8x64xbf16>
    %c0_147 = arith.constant 0 : index
    %c0_148 = arith.constant 0 : index
    %161 = vector.load %arg6[%c0_147, %c0_148] : memref<64x256xbf16, #tpu.memory_space<vmem>>, vector<64x256xbf16>
    %cst_149 = arith.constant dense<0.000000e+00> : vector<8x256xf32>
    %162 = tpu.matmul %160, %161, %cst_149 {dimension_numbers = #tpu.dot_dimension_numbers<[1], [0], [0], [1], [0, 0, 1, 1], [], []>} : vector<8x64xbf16>, vector<64x256xbf16>, vector<8x256xf32> -> vector<8x256xf32>
    %163 = arith.addf %162, %56 : vector<8x256xf32>
    %cst_150 = arith.constant 0.000000e+00 : f32
    %164 = vector.broadcast %cst_150 : f32 to vector<8x256xf32>
    %165 = arith.maximumf %163, %164 : vector<8x256xf32>
    %166 = arith.truncf %165 : vector<8x256xf32> to vector<8x256xbf16>
    %c0_151 = arith.constant 0 : index
    %c0_152 = arith.constant 0 : index
    %167 = vector.load %arg9[%c0_151, %c0_152] : memref<256x64xbf16, #tpu.memory_space<vmem>>, vector<256x64xbf16>
    %cst_153 = arith.constant dense<0.000000e+00> : vector<8x64xf32>
    %168 = tpu.matmul %166, %167, %cst_153 {dimension_numbers = #tpu.dot_dimension_numbers<[1], [0], [0], [1], [0, 0, 1, 1], [], []>} : vector<8x256xbf16>, vector<256x64xbf16>, vector<8x64xf32> -> vector<8x64xf32>
    %c0_154 = arith.constant 0 : index
    %c0_155 = arith.constant 0 : index
    %169 = vector.load %arg10[%c0_154, %c0_155] : memref<1x64xf32, #tpu.memory_space<vmem>>, vector<1x64xf32>
    %170 = vector.broadcast %169 : vector<1x64xf32> to vector<8x64xf32>
    %171 = arith.addf %168, %170 : vector<8x64xf32>
    %172 = arith.truncf %171 : vector<8x64xf32> to vector<8x64xbf16>
    %c0_156 = arith.constant 0 : index
    %c6_157 = arith.constant 6 : index
    %c0_158 = arith.constant 0 : index
    %c0_159 = arith.constant 0 : index
    %173 = vector.load %arg11[%c0_156, %c6_157, %c0_158, %c0_159] : memref<1x8x8x64xbf16, #tpu.memory_space<vmem>>, vector<1x1x8x64xbf16>
    %174 = vector.shape_cast %173 : vector<1x1x8x64xbf16> to vector<8x64xbf16>
    %175 = vector.shape_cast %172 : vector<8x64xbf16> to vector<1x1x8x64xbf16>
    tpu.vector_store %arg11[%c0_156, %c6_157, %c0_158, %c0_159], %175 {strides = array<i32>} : memref<1x8x8x64xbf16, #tpu.memory_space<vmem>>, vector<1x1x8x64xbf16>,
    %c0_160 = arith.constant 0 : index
    %c7_161 = arith.constant 7 : index
    %c0_162 = arith.constant 0 : index
    %c0_163 = arith.constant 0 : index
    %176 = vector.load %arg2[%c0_160, %c7_161, %c0_162, %c0_163] : memref<1x8x8x64xbf16, #tpu.memory_space<vmem>>, vector<1x1x8x64xbf16>
    %177 = vector.shape_cast %176 : vector<1x1x8x64xbf16> to vector<8x64xbf16>
    %c0_164 = arith.constant 0 : index
    %c0_165 = arith.constant 0 : index
    %178 = vector.load %arg6[%c0_164, %c0_165] : memref<64x256xbf16, #tpu.memory_space<vmem>>, vector<64x256xbf16>
    %cst_166 = arith.constant dense<0.000000e+00> : vector<8x256xf32>
    %179 = tpu.matmul %177, %178, %cst_166 {dimension_numbers = #tpu.dot_dimension_numbers<[1], [0], [0], [1], [0, 0, 1, 1], [], []>} : vector<8x64xbf16>, vector<64x256xbf16>, vector<8x256xf32> -> vector<8x256xf32>
    %180 = arith.addf %179, %56 : vector<8x256xf32>
    %cst_167 = arith.constant 0.000000e+00 : f32
    %181 = vector.broadcast %cst_167 : f32 to vector<8x256xf32>
    %182 = arith.maximumf %180, %181 : vector<8x256xf32>
    %183 = arith.truncf %182 : vector<8x256xf32> to vector<8x256xbf16>
    %c0_168 = arith.constant 0 : index
    %c0_169 = arith.constant 0 : index
    %184 = vector.load %arg9[%c0_168, %c0_169] : memref<256x64xbf16, #tpu.memory_space<vmem>>, vector<256x64xbf16>
    %cst_170 = arith.constant dense<0.000000e+00> : vector<8x64xf32>
    %185 = tpu.matmul %183, %184, %cst_170 {dimension_numbers = #tpu.dot_dimension_numbers<[1], [0], [0], [1], [0, 0, 1, 1], [], []>} : vector<8x256xbf16>, vector<256x64xbf16>, vector<8x64xf32> -> vector<8x64xf32>
    %c0_171 = arith.constant 0 : index
    %c0_172 = arith.constant 0 : index
    %186 = vector.load %arg10[%c0_171, %c0_172] : memref<1x64xf32, #tpu.memory_space<vmem>>, vector<1x64xf32>
    %187 = vector.broadcast %186 : vector<1x64xf32> to vector<8x64xf32>
    %188 = arith.addf %185, %187 : vector<8x64xf32>
    %189 = arith.truncf %188 : vector<8x64xf32> to vector<8x64xbf16>
    %c0_173 = arith.constant 0 : index
    %c7_174 = arith.constant 7 : index
    %c0_175 = arith.constant 0 : index
    %c0_176 = arith.constant 0 : index
    %190 = vector.load %arg11[%c0_173, %c7_174, %c0_175, %c0_176] : memref<1x8x8x64xbf16, #tpu.memory_space<vmem>>, vector<1x1x8x64xbf16>
    %191 = vector.shape_cast %190 : vector<1x1x8x64xbf16> to vector<8x64xbf16>
    %192 = vector.shape_cast %189 : vector<8x64xbf16> to vector<1x1x8x64xbf16>
    tpu.vector_store %arg11[%c0_173, %c7_174, %c0_175, %c0_176], %192 {strides = array<i32>} : memref<1x8x8x64xbf16, #tpu.memory_space<vmem>>, vector<1x1x8x64xbf16>,
    return
  }
  func.func @transform_0(%arg0: i32, %arg1: i32) -> (i32, i32, i32, i32) {
    %c0_i32 = arith.constant 0 : i32
    %c0_i32_0 = arith.constant 0 : i32
    %c0_i32_1 = arith.constant 0 : i32
    return %arg0, %c0_i32, %arg1, %c0_i32_0 : i32, i32, i32, i32
  }
  func.func @transform_1(%arg0: i32, %arg1: i32) -> (i32, i32, i32) {
    %c0_i32 = arith.constant 0 : i32
    %c0_i32_0 = arith.constant 0 : i32
    return %arg0, %arg1, %c0_i32 : i32, i32, i32
  }
  func.func @transform_2(%arg0: i32, %arg1: i32) -> (i32, i32) {
    %c0_i32 = arith.constant 0 : i32
    %c0_i32_0 = arith.constant 0 : i32
    %c0_i32_1 = arith.constant 0 : i32
    return %c0_i32, %c0_i32_0 : i32, i32
  }
  func.func @transform_3(%arg0: i32, %arg1: i32) -> (i32, i32) {
    %c0_i32 = arith.constant 0 : i32
    %c0_i32_0 = arith.constant 0 : i32
    %c0_i32_1 = arith.constant 0 : i32
    return %c0_i32, %c0_i32_0 : i32, i32
  }
  func.func @transform_4(%arg0: i32, %arg1: i32) -> (i32, i32) {
    %c0_i32 = arith.constant 0 : i32
    %c0_i32_0 = arith.constant 0 : i32
    %c0_i32_1 = arith.constant 0 : i32
    return %c0_i32, %c0_i32_0 : i32, i32
  }
  func.func @transform_5(%arg0: i32, %arg1: i32) -> (i32, i32) {
    %c0_i32 = arith.constant 0 : i32
    %c0_i32_0 = arith.constant 0 : i32
    %c0_i32_1 = arith.constant 0 : i32
    return %c0_i32, %c0_i32_0 : i32, i32
  }
  func.func @transform_6(%arg0: i32, %arg1: i32) -> (i32, i32) {
    %c0_i32 = arith.constant 0 : i32
    %c0_i32_0 = arith.constant 0 : i32
    %c0_i32_1 = arith.constant 0 : i32
    return %c0_i32, %c0_i32_0 : i32, i32
  }
  func.func @transform_7(%arg0: i32, %arg1: i32) -> (i32, i32) {
    %c0_i32 = arith.constant 0 : i32
    %c0_i32_0 = arith.constant 0 : i32
    %c0_i32_1 = arith.constant 0 : i32
    return %c0_i32, %c0_i32_0 : i32, i32
  }
  func.func @transform_8(%arg0: i32, %arg1: i32) -> (i32, i32) {
    %c0_i32 = arith.constant 0 : i32
    %c0_i32_0 = arith.constant 0 : i32
    %c0_i32_1 = arith.constant 0 : i32
    return %c0_i32, %c0_i32_0 : i32, i32
  }
  func.func @transform_9(%arg0: i32, %arg1: i32) -> (i32, i32, i32, i32) {
    %c0_i32 = arith.constant 0 : i32
    %c0_i32_0 = arith.constant 0 : i32
    %c0_i32_1 = arith.constant 0 : i32
    return %arg0, %c0_i32, %arg1, %c0_i32_0 : i32, i32, i32, i32
  }
  func.func @transform_10(%arg0: i32, %arg1: i32) -> (i32, i32, i32) {
    %c0_i32 = arith.constant 0 : i32
    %c0_i32_0 = arith.constant 0 : i32
    return %arg0, %arg1, %c0_i32 : i32, i32, i32
  }
}

</mosaic_0001>

<bundles_post_ra>
// kernel: model_forward.1
= control target key start
LH: loop header
LB: loop body
LE: loop exit
PB: predicated region body
PF: predicated region fallthrough
CT: control target
= control target key end

     0   :  { %s4578_s0 = inlined_call_operand.vmem [shape: bf16[2,8,8,64], index: 0, kind: input, shape index: {}]   ;;  %s4579_s1 = inlined_call_operand.vmem [shape: f32[2,8,32], index: 1, kind: input, shape index: {}]   ;;  %s4580_s2 = inlined_call_operand.vmem [shape: bf16[64,64], index: 2, kind: input, shape index: {}]   ;;  %s4581_s3 = inlined_call_operand.vmem [shape: f32[1,64], index: 3, kind: input, shape index: {}]   ;;  %s4582_s4 = inlined_call_operand.vmem [shape: bf16[64,256], index: 4, kind: input, shape index: {}]   ;;  %s4583_s5 = inlined_call_operand.vmem [shape: bf16[32,256], index: 5, kind: input, shape index: {}]   ;;  %s4584_s6 = inlined_call_operand.vmem [shape: f32[1,256], index: 6, kind: input, shape index: {}]   ;;  %s4585_s7 = inlined_call_operand.vmem [shape: bf16[256,64], index: 7, kind: input, shape index: {}]   ;;  %s4586_s8 = inlined_call_operand.vmem [shape: f32[1,64], index: 8, kind: input, shape index: {}]   ;;  %s4587_s9 = inlined_call_operand.hbm [shape: bf16[2,8,8,64], index: 9, kind: output, shape index: {0}]   ;;  %s4588_s10 = inlined_call_operand.vmem [shape: f32[2,8,64], index: 10, kind: output, shape index: {1}]  }
   0x1   :  { %4591 = sst [smem:[#allocation6_spill]] %s4578_s0 }
   0x2   :  { %16 = vsyncpa [#allocation3], 0 }
   0x3   :  { %18 = vsyncpa [#allocation3 + $0x1], 0  ;;  %s3828_s13 = smov 0   ;;  %s3830_s14 = smov 0  }
   0x4   :  { %s3832_s15 = smov 0   ;;  %s3834_s16 = smov 0  }
   0x5   :  { %s3836_s17 = smov 0   ;;  %s3838_s18 = smov 0  }
   0x6 LB: > { %s2992_s19 = sadd.s32 4294967295, %s3763_s18   ;;  %s2993_s20 = sadd.s32 4294967294, %s3763_s18   ;;  %s3763_s18 = sphi %s3838_s18, %s24_s18   ;;  %s3759_s17 = sphi %s3836_s17, %s4602_s17   ;;  %s3755_s16 = sphi %s3834_s16, %s4601_s16   ;;  %s3751_s15 = sphi %s3832_s15, %s4600_s15   ;;  %s3747_s14 = sphi %s3830_s14, %s4599_s14   ;;  %s3743_s13 = sphi %s3828_s13, %s4598_s13  }
   0x7   : > { %s36_s21 = sadd.s32 1, %s3759_s17  ;;  %s248_s22 = sadd.s32 1, %s3751_s15 }
   0x8   : > { %p38_p0 = scmp.ge.s32.totalorder %s36_s21, 2  ;;  %p258_p1 = scmp.ne.s32.totalorder %s3751_s15, %s3747_s14 }
   0x9   : > { %p259_p2 = scmp.eq.s32.totalorder %s2992_s19, 1  ;;  %p264_p3 = scmp.ne.s32.totalorder %s3747_s14, %s3743_s13 }
   0xa   : > { %s4604_s21 = smov (%p38_p0, %s36_s21), 0  ;;  %p265_p5 = scmp.eq.s32.totalorder %s2993_s20, 1 }
   0xb   : > { %4592 = sst [smem:[#allocation5_spill]] %s4604_s21  ;;  %p3868_p4 = por %p259_p2, %p258_p1 }
   0xc   : > { %s243_s24 = ssub.s32 %s3759_s17, %s4604_s21  ;;  %p2996_p6 = scmp.ge.s32.totalorder %s3763_s18, 1 }
   0xd   : > { %p246_p7 = scmp.eq.s32.totalorder %s243_s24, 0  ;;  %p3875_p8 = por %p265_p5, %p264_p3 }
   0xe   : > { %p353_p9 = scmp.lt.s32.totalorder %s3763_s18, 3 }
   0xf   : > { %s3881_s26 = scalar_select %p246_p7, %s3751_s15, %s248_s22  }
  0x10   : > { %p354_p10 = pnand %p2996_p6, %p353_p9 }
  0x11   : > { %p408_p11 = scmp.lt.s32.totalorder (!%p354_p10), %s3755_s16, 1  ;;  %s4595_s0 = sld [smem:[#allocation6_spill]] (!%p354_p10) }
  0x12   : > { %357 = sbr.rel (%p354_p10) target bundleno = 1455 (0x5af), region = 56  ;;  %s4590_s12 = sand.u32 (!%p354_p10), 1, %s3747_s14  }
  0x13   : > { %s3770_s27 = smov (!%p354_p10), [#allocation2]  }
  0x14   : > { %s3691_s29 = sshll.u32 (!%p354_p10), %s3770_s27, 4  ;;  %s3692_s29 = int_to_ptr.vmem [resolvable:$false] %s3691_s29 }
  0x17   : > { %v3523_v0 = vld [vmem:[%s4580_s2 + $0x18] sm:$0xff]   ;;  %v3765_v1 = vmov 0.0   ;;  %v3524_v2 = vld [vmem:[%s4580_s2 + $0x10] sm:$0xff]   ;;  %vm3766_vm0 = vmmov 0   ;;  %v3525_v3 = vld [vmem:[%s4580_s2 + $0x8] sm:$0xff]   ;;  %s3894_s19 = scalar_select %p408_p11, %s3755_s16, 1 }
  0x18   : > { %3449 = vmatprep.subr.bf16.mxu0 %v3765_v1  ;;  %3457 = vmatprep.mubr.msk.bf16.mxu0 %vm3766_vm0, %v3765_v1  ;;  %v3526_v4 = vld [vmem:[%s4580_s2] sm:$0xff]   ;;  %vm502_vm1 = vcmask 523264   ;;  %v3919_v27 = vld [vmem:[%s4582_s4 + $0x34] ss:$8 sps:$4 sm:$0xff]   ;;  %v3924_v28 = vld [vmem:[%s4582_s4 + $0x30] ss:$8 sps:$4 sm:$0xff]  }
  0x19   : > { %3450 = vmatpush3.bf16.msra.mxu0 %v3523_v0  ;;  %s3247_s20 = sshll.u32 %s3894_s19, 5  ;;  %s3000_s22 = sshll.u32 %s3894_s19, 3  ;;  %v3929_v29 = vld [vmem:[%s4582_s4 + $0x24] ss:$8 sps:$4 sm:$0xff]   ;;  %703 = vmatprep.subr.bf16.mxu1 %v3919_v27  ;;  %v3936_v30 = vld [vmem:[%s4582_s4 + $0x20] ss:$8 sps:$4 sm:$0xff]  }
  0x1a   : > { %3451 = vmatprep.subr.bf16.mxu0 %v3765_v1  ;;  %s3901_s28 = scalar_lea.vmem %s4595_s0, %s3247_s20  ;;  %s422_s11 = scalar_lea.vmem %s4579_s1, %s3000_s22  ;;  %704 = vmatpush1.bf16.msra.mxu1 %v3924_v28  ;;  %v3768_v31 = vmov 0   ;;  %v3539_v32 = vld [vmem:[%s4583_s5 + $0x10] ss:$8 sps:$4 sm:$0xff]   ;;  %v3541_v33 = vld [vmem:[%s4583_s5 + $0x14] ss:$8 sps:$4 sm:$0xff]   ;;  %v3554_v57 = vld [vmem:[%s4585_s7 + $0x68] sm:$0xff]  }
  0x1b   : > { %v3250_v5 = vld [vmem:[%s3901_s28] sm:$0xff]   ;;  %v3265_v6 = vld [vmem:[%s3901_s28 + $0x8] sm:$0xff]   ;;  %v3266_v10 = vld [vmem:[%s3901_s28 + $0x10] sm:$0xff]   ;;  %s3767_s20 = smov 32   ;;  %727 = vmatprep.mubr.bf16.mxu1 %v3768_v31  ;;  %705 = vmatprep.subr.bf16.mxu1 %v3929_v29  ;;  %s429_s30 = scalar_lea.vmem %s4588_s10, %s3000_s22  ;;  %vm598_vm2 = vcmask 261120   ;;  %vm916_vm3 = vcmask 519168  }
  0x1c   : > { %v3251_v7 = vunpack.c.l.bf16 %v3250_v5  ;;  %v3252_v8 = vunpack.c.h.bf16 %v3250_v5  ;;  %v3255_v9 = vunpack.c.l.bf16 %v3265_v6  ;;  %v550_v11 = vld [vmem:[%s422_s11] sm:$0xff]  ;;  %v3256_v13 = vunpack.c.h.bf16 %v3265_v6  ;;  %v3267_v14 = vld [vmem:[%s3901_s28 + $0x18] sm:$0xff]   ;;  %v3550_v53 = vld [vmem:[%s4585_s7 + $0x70] sm:$0xff]   ;;  %s3769_s19 = smov 96   ;;  %s2997_s22 = sshll.u32 %s4590_s12, 5 }
  0x1d   : > { %3452 = vmatpush3.bf16.msra.mxu0 %v3524_v2  ;;  %552 = vrot.lane.b32.xlu0 %v550_v11, %s3767_s20  ;;  %v3259_v16 = vunpack.c.l.bf16 %v3266_v10  ;;  %v3260_v18 = vunpack.c.h.bf16 %v3266_v10  ;;  %v3263_v20 = vunpack.c.l.bf16 %v3267_v14  ;;  %v3264_v22 = vunpack.c.h.bf16 %v3267_v14  ;;  %v3949_v34 = vld [vmem:[%s4582_s4 + $0x14] ss:$8 sps:$4 sm:$0xff]   ;;  %v3544_v35 = vld [vmem:[%s4583_s5 + $0x4] ss:$8 sps:$4 sm:$0xff]   ;;  %v3542_v36 = vld [vmem:[%s4583_s5] ss:$8 sps:$4 sm:$0xff]  }
  0x1e   : > { %3453 = vmatprep.subr.bf16.mxu0 %v3765_v1  ;;  %v436_v12 = vadd.f32 %v3252_v8, %v3251_v7  ;;  %706 = vmatpush1.bf16.msra.mxu1 %v3936_v30  ;;  %v3962_v37 = vld [vmem:[%s4582_s4 + $0x10] ss:$8 sps:$4 sm:$0xff]   ;;  %v3968_v38 = vld [vmem:[%s4582_s4 + $0x4] ss:$8 sps:$4 sm:$0xff]   ;;  %v3974_v39 = vld [vmem:[%s4582_s4] ss:$8 sps:$4 sm:$0xff]  }
  0x1f   : > { %707 = vmatprep.subr.bf16.mxu1 %v3949_v34  ;;  %v643_v40 = vld [vmem:[%s3901_s28] sm:$0xf]  ;;  %v3046_v49 = vld [vmem:[%s3901_s28 + $0x4] sm:$0xf]  ;;  %v3545_v50 = vld [vmem:[%s4585_s7 + $0x78] sm:$0xff]   ;;  %s4243_s21 = scalar_lea.vmem [#allocation2], %s2997_s22 }
  0x20   : > { %v440_v15 = vadd.f32 %v3255_v9, %v436_v12  ;;  %v3009_v41 = vld [vmem:[%s4581_s3] ss:$0 sm:$0xff]  ;;  %v3546_v51 = vld [vmem:[%s4585_s7 + $0x78] sm:$0xff]   ;;  %v3552_v55 = vld [vmem:[%s4585_s7 + $0x30] sm:$0xff]   ;;  %s3248_s12 = sshll.u32 %s3755_s16, 9  ;;  %s4596_s16 = sand.u32 1, %s3747_s14  }
  0x21   : > { %3454 = vmatpush3.bf16.msra.mxu0 %v3525_v3  ;;  %v3548_v52 = vld [vmem:[%s4585_s7 + $0x38] sm:$0xff]   ;;  %v3556_v59 = vld [vmem:[%s4585_s7 + $0x28] sm:$0xff]   ;;  %v3558_v60 = vld [vmem:[%s4585_s7 + $0x60] sm:$0xff]   ;;  %s4523_s20 = scalar_lea.hbm %s4587_s9, %s3248_s12  ;;  %s4533_s22 = scalar_lea.sflag [#allocation3], %s4596_s16 }
  0x22   : > { %3455 = vmatprep.subr.bf16.mxu0 %v3765_v1  ;;  %v444_v17 = vadd.f32 %v3256_v13, %v440_v15  ;;  %708 = vmatpush1.bf16.msra.mxu1 %v3962_v37  ;;  %v3560_v61 = vld [vmem:[%s4585_s7 + $0x20] sm:$0xff]   ;;  %v3562_v62 = vld [vmem:[%s4585_s7 + $0x58] sm:$0xff]   ;;  %v3566_v0 = vld [vmem:[%s4585_s7 + $0x50] sm:$0xff]  }
  0x23   : > { %709 = vmatprep.subr.bf16.mxu1 %v3968_v38  ;;  %v3564_v63 = vld [vmem:[%s4585_s7 + $0x18] sm:$0xff]   ;;  %v3549_v9 = vld [vmem:[%s4585_s7 + $0x70] sm:$0xff]   ;;  %v3553_v11 = vld [vmem:[%s4585_s7 + $0x68] sm:$0xff]  }
  0x24   : > { %v448_v19 = vadd.f32 %v3259_v16, %v444_v17  ;;  %v3547_v7 = vld [vmem:[%s4585_s7 + $0x38] sm:$0xff]   ;;  %v3551_v10 = vld [vmem:[%s4585_s7 + $0x30] sm:$0xff]   ;;  %v3555_v12 = vld [vmem:[%s4585_s7 + $0x28] sm:$0xff]  }
  0x25   : > { %3456 = vmatpush3.bf16.msra.mxu0 %v3526_v4  ;;  %v3557_v13 = vld [vmem:[%s4585_s7 + $0x60] sm:$0xff]   ;;  %v3561_v15 = vld [vmem:[%s4585_s7 + $0x58] sm:$0xff]   ;;  %v3565_v17 = vld [vmem:[%s4585_s7 + $0x50] sm:$0xff]  }
  0x26   : > { %v452_v21 = vadd.f32 %v3260_v18, %v448_v19  ;;  %614 = vmatprep.subr.bf16.mxu0 %v3541_v33  ;;  %710 = vmatpush1.bf16.msra.mxu1 %v3974_v39  ;;  %v3559_v14 = vld [vmem:[%s4585_s7 + $0x20] sm:$0xff]   ;;  %v3563_v16 = vld [vmem:[%s4585_s7 + $0x18] sm:$0xff]  }
  0x27   : > { %978 = vmatprep.subr.bf16.mxu1 %v3919_v27  ;;  %v3573_v33 = vld [vmem:[%s4585_s7 + $0x40] sm:$0xff]  }
  0x28   : > { %v456_v23 = vadd.f32 %v3263_v20, %v452_v21  ;;  %v3567_v20 = vld [vmem:[%s4585_s7 + $0x10] sm:$0xff]  }
  0x29   : > { %3028 = vmatmul.mubr.msk.bf16.vlgmr.msra.gmra.mxu1 %vm502_vm1, %v643_v40  ;;  %v3568_v21 = vld [vmem:[%s4585_s7 + $0x10] sm:$0xff]   ;;  %v3576_v40 = vld [vmem:[%s4585_s7] sm:$0xff]  }
  0x2a   : > { %v460_v24 = vadd.f32 %v3264_v22, %v456_v23  ;;  %979 = vmatpush1.bf16.msra.mxu1 %v3924_v28  ;;  %1002 = vmatprep.mubr.bf16.mxu1 %v3768_v31  ;;  %v3569_v23 = vld [vmem:[%s4585_s7 + $0x48] sm:$0xff]  }
  0x2b   : > { %980 = vmatprep.subr.bf16.mxu1 %v3929_v29 }
  0x2c   : > { %v461_v25 = vmul.f32 0.125, %v460_v24  ;;  %v3570_v24 = vld [vmem:[%s4585_s7 + $0x48] sm:$0xff]  }
  0x2e   : > { %v462_v26 = vpack.c.bf16 %v461_v25, %v461_v25  ;;  %981 = vmatpush1.bf16.msra.mxu1 %v3936_v30 }
  0x2f   : > { %982 = vmatprep.subr.bf16.mxu1 %v3949_v34 }
  0x30   : > { %3458 = vmatmul.mubr.msk.bf16.vlgmr.msra.gmra.mxu0 %vm502_vm1, %v462_v26  ;;  %v3571_v26 = vld [vmem:[%s4585_s7 + $0x8] sm:$0xff]  }
  0x31   : > { %634 = vmatprep.mubr.bf16.mxu0 %v3768_v31  ;;  %615 = vmatpush1.bf16.msra.mxu0 %v3539_v32  ;;  %v3572_v32 = vld [vmem:[%s4585_s7 + $0x8] sm:$0xff]  }
  0x32   : > { %616 = vmatprep.subr.bf16.mxu0 %v3544_v35  ;;  %983 = vmatpush1.bf16.msra.mxu1 %v3962_v37  ;;  %v3574_v35 = vld [vmem:[%s4585_s7 + $0x40] sm:$0xff]  }
  0x33   : > { %984 = vmatprep.subr.bf16.mxu1 %v3968_v38 }
  0x35   : > { %617 = vmatpush1.bf16.msra.mxu0 %v3542_v36  ;;  %v3575_v36 = vld [vmem:[%s4585_s7] sm:$0xff]  }
  0x36   : > { %985 = vmatpush1.bf16.msra.mxu1 %v3974_v39  ;;  %3273 = vmatprep.subr.bf16.mxu0 %v3545_v50 }
  0x37   : > { %3295 = vmatprep.subr.bf16.mxu1 %v3546_v51 }
  0x39   : > { %3055 = vmatmul.mubr.msk.bf16.vlgmr.msra.gmra.mxu1 %vm502_vm1, %v3046_v49 }
  0x3a   : > { %3296 = vmatpush3.bf16.msra.mxu1 %v3548_v52 }
  0x3b   : > { %3297 = vmatprep.subr.bf16.mxu1 %v3550_v53 }
  0x3e   : > { %3298 = vmatpush3.bf16.msra.mxu1 %v3552_v55 }
  0x3f   : > { %3299 = vmatprep.subr.bf16.mxu1 %v3554_v57 }
  0x42   : > { %3300 = vmatpush3.bf16.msra.mxu1 %v3556_v59 }
  0x43   : > { %3301 = vmatprep.subr.bf16.mxu1 %v3558_v60 }
  0x46   : > { %3302 = vmatpush3.bf16.msra.mxu1 %v3560_v61 }
  0x47   : > { %3303 = vmatprep.subr.bf16.mxu1 %v3562_v62 }
  0x4a   : > { %3304 = vmatpush3.bf16.msra.mxu1 %v3564_v63 }
  0x4b   : > { %3305 = vmatprep.subr.bf16.mxu1 %v3566_v0 }
  0x4e   : > { %3306 = vmatpush3.bf16.msra.mxu1 %v3568_v21  ;;  %v3594_v21 = vld [vmem:[%s4585_s7 + $0x58] sm:$0xff]  }
  0x4f   : > { %3307 = vmatprep.subr.bf16.mxu1 %v3570_v24  ;;  %v3597_v24 = vld [vmem:[%s4585_s7 + $0x50] sm:$0xff]  }
  0x52   : > { %3308 = vmatpush3.bf16.msra.mxu1 %v3572_v32  ;;  %v3600_v32 = vld [vmem:[%s4585_s7 + $0x10] sm:$0xff]  }
  0x53   : > { %3309 = vmatprep.subr.bf16.mxu1 %v3574_v35  ;;  %v3602_v35 = vld [vmem:[%s4585_s7 + $0x48] sm:$0xff]  }
  0x56   : > { %3310 = vmatpush3.bf16.msra.mxu1 %v3576_v40  ;;  %v3604_v40 = vld [vmem:[%s4585_s7 + $0x8] sm:$0xff]  }
  0x57   : > { %1528 = vmatprep.subr.bf16.mxu1 %v3919_v27 }
  0x8f   : > { %v553_v54 = vpop.permute.xlu0 %552 }
  0xe9   : > { %v4036_v1 = vpop.f32.mrf.mxu1 }
  0xeb   : > { %v4038_v2 = vpop.f32.mrf.mxu1 }
  0xed   : > { %v733_v3 = vpop.f32.mrf.mxu1 }
  0xef   : > { %v734_v4 = vpop.f32.mrf.mxu1 }
  0xf0   : > { %v540_v42 = vpop.f32.mrf.mxu0  ;;  %v3074_v4 = vld [vmem:[%s3901_s28 + $0x8] sm:$0xf] }
  0xf1   : > { %v541_v43 = vadd.f32 %v3009_v41, %v540_v42  ;;  %v568_v41 = vlaneseq }
  0xf2   : > { %v3459_v44 = vpop.f32.mrf.mxu0 }
  0xf3   : > { %546 = vst.msk [vmem:[%s429_s30] sm:$0xff] %vm502_vm1, %v541_v43  ;;  %v547_v45 = vmul.f32 0.5, %v541_v43  ;;  %v569_v42 = vshrl.u32 %v568_v41, 7  ;;  %v566_v44 = vld [vmem:[%s4584_s6] sm:$0x3]  ;;  %s3693_s30 = scalar_lea.vmem %s3692_s29, 1024 }
  0xf4   : > { %v543_v46 = vpop.f32.mrf.mxu0  ;;  %v3605_v41 = vld [vmem:[%s4585_s7 + $0x40] sm:$0xff]  }
  0xf5   : > { %v548_v47 = vmul.f32 1.442695, %v547_v45  ;;  %v574_v45 = vsub.s32 1, %v569_v42 }
  0xf6   : > { %v3460_v48 = vpop.f32.mrf.mxu0 }
  0xf7   : > { %3685 = vpow2.f32 %v548_v47  ;;  %v575_v47 = vrot.slane %v566_v44, %v574_v45 }
  0xf9   : > { %v1004_v18 = vpop.f32.mrf.mxu1 }
  0xfb   : > { %v1006_v19 = vpop.f32.mrf.mxu1 }
  0xfd   : > { %v1008_v22 = vpop.f32.mrf.mxu1 }
  0xfe   : > { %v3595_v22 = vld [vmem:[%s4585_s7 + $0x18] sm:$0xff]  }
  0xff   : > { %v1009_v25 = vpop.f32.mrf.mxu1 }
 0x100   : > { %v3598_v25 = vld [vmem:[%s4585_s7 + $0x50] sm:$0xff]  }
 0x104   : > { %v3686_v56 = vpop.eup %3685 }
 0x105   : > { %v555_v58 = vmul.f32 %v3686_v56, %v553_v54 }
 0x107   : > { %557 = vrot.lane.b32.xlu0 %v555_v58, %s3769_s19 }
 0x179   : > { %v558_v5 = vpop.permute.xlu0 %557 }
 0x17a   : > { %v560_v6 = vadd.f32 %v558_v5, %v541_v43  ;;  %v570_v43 = vsub.s32 0, %v569_v42  ;;  %v3102_v5 = vld [vmem:[%s3901_s28 + $0xc] sm:$0xf]  ;;  %v3606_v42 = vld [vmem:[%s4585_s7 + $0x40] sm:$0xff]  }
 0x17c   : > { %v561_v8 = vpack.c.bf16 %v560_v6, %v560_v6  ;;  %v571_v46 = vrot.slane %v566_v44, %v570_v43  ;;  %v3579_v6 = vld [vmem:[%s4585_s7 + $0x38] sm:$0xff]   ;;  %v3607_v43 = vld [vmem:[%s4585_s7] sm:$0xff]  }
 0x17d   : > { %v3608_v44 = vld [vmem:[%s4585_s7] sm:$0xff]  }
 0x17e   : > { %3019 = vmatmul.mubr.msk.bf16.vlgmr.msra.gmra.mxu0 %vm598_vm2, %v561_v8  ;;  %v3581_v8 = vld [vmem:[%s4585_s7 + $0x70] sm:$0xff]  }
 0x17f   : > { %3274 = vmatpush3.bf16.msra.mxu0 %v3547_v7  ;;  %v3580_v7 = vld [vmem:[%s4585_s7 + $0x38] sm:$0xff]  }
 0x180   : > { %3275 = vmatprep.subr.bf16.mxu0 %v3549_v9  ;;  %v3582_v9 = vld [vmem:[%s4585_s7 + $0x70] sm:$0xff]  }
 0x183   : > { %3276 = vmatpush3.bf16.msra.mxu0 %v3551_v10  ;;  %v3583_v10 = vld [vmem:[%s4585_s7 + $0x30] sm:$0xff]  }
 0x184   : > { %3277 = vmatprep.subr.bf16.mxu0 %v3553_v11  ;;  %v3584_v11 = vld [vmem:[%s4585_s7 + $0x30] sm:$0xff]  }
 0x187   : > { %3278 = vmatpush3.bf16.msra.mxu0 %v3555_v12  ;;  %v3585_v12 = vld [vmem:[%s4585_s7 + $0x68] sm:$0xff]  }
 0x188   : > { %3279 = vmatprep.subr.bf16.mxu0 %v3557_v13  ;;  %v3586_v13 = vld [vmem:[%s4585_s7 + $0x68] sm:$0xff]  }
 0x18b   : > { %3280 = vmatpush3.bf16.msra.mxu0 %v3559_v14  ;;  %v3587_v14 = vld [vmem:[%s4585_s7 + $0x28] sm:$0xff]  }
 0x18c   : > { %3281 = vmatprep.subr.bf16.mxu0 %v3561_v15  ;;  %v3588_v15 = vld [vmem:[%s4585_s7 + $0x28] sm:$0xff]  }
 0x18f   : > { %3282 = vmatpush3.bf16.msra.mxu0 %v3563_v16  ;;  %v3589_v16 = vld [vmem:[%s4585_s7 + $0x60] sm:$0xff]  }
 0x190   : > { %3283 = vmatprep.subr.bf16.mxu0 %v3565_v17  ;;  %v3590_v17 = vld [vmem:[%s4585_s7 + $0x60] sm:$0xff]  }
 0x193   : > { %3284 = vmatpush3.bf16.msra.mxu0 %v3567_v20  ;;  %v3593_v20 = vld [vmem:[%s4585_s7 + $0x58] sm:$0xff]  }
 0x194   : > { %3285 = vmatprep.subr.bf16.mxu0 %v3569_v23  ;;  %v3596_v23 = vld [vmem:[%s4585_s7 + $0x18] sm:$0xff]  }
 0x197   : > { %3286 = vmatpush3.bf16.msra.mxu0 %v3571_v26  ;;  %v3599_v26 = vld [vmem:[%s4585_s7 + $0x10] sm:$0xff]  }
 0x198   : > { %3287 = vmatprep.subr.bf16.mxu0 %v3573_v33  ;;  %v3601_v33 = vld [vmem:[%s4585_s7 + $0x48] sm:$0xff]  }
 0x19b   : > { %3288 = vmatpush3.bf16.msra.mxu0 %v3575_v36  ;;  %v3603_v36 = vld [vmem:[%s4585_s7 + $0x8] sm:$0xff]  }
 0x19c   : > { %1253 = vmatprep.subr.bf16.mxu0 %v3919_v27 }
 0x23e   : > { %v636_v48 = vpop.f32.mrf.mxu0 }
 0x23f   : > { %v4105_v49 = vadd.f32 %v636_v48, %v571_v46 }
 0x240   : > { %v638_v50 = vpop.f32.mrf.mxu0 }
 0x241   : > { %v4107_v51 = vadd.f32 %v638_v50, %v575_v47  ;;  %v730_v52 = vadd.f32 %v4036_v1, %v4105_v49  ;;  %v1005_v53 = vadd.f32 %v1004_v18, %v4105_v49  ;;  %v3577_v1 = vld [vmem:[%s4585_s7 + $0x78] sm:$0xff]   ;;  %v3591_v18 = vld [vmem:[%s4585_s7 + $0x20] sm:$0xff]  }
 0x242   : > { %v640_v54 = vpop.f32.mrf.mxu0  ;;  %v4237_v47 = vld [vmem:[%s4586_s8] ss:$0 sm:$0xff] }
 0x243   : > { %v732_v55 = vadd.f32 %v4038_v2, %v4107_v51  ;;  %v1007_v56 = vadd.f32 %v1006_v19, %v4107_v51  ;;  %v736_v58 = vmax.f32 %v730_v52, 0.0  ;;  %v1011_v59 = vmax.f32 %v1005_v53, 0.0  ;;  %v3578_v2 = vld [vmem:[%s4585_s7 + $0x78] sm:$0xff]   ;;  %v3592_v19 = vld [vmem:[%s4585_s7 + $0x20] sm:$0xff]  }
 0x244   : > { %v641_v57 = vpop.f32.mrf.mxu0 }
 0x245   : > { %v737_v60 = vmax.f32 %v732_v55, 0.0  ;;  %v1012_v61 = vmax.f32 %v1007_v56, 0.0  ;;  %v738_v0 = vpack.c.bf16 %v736_v58, %v736_v58  ;;  %v1013_v3 = vpack.c.bf16 %v1011_v59, %v1011_v59 }
 0x247   : > { %v739_v62 = vpack.c.bf16 %v737_v60, %v737_v60  ;;  %v1014_v63 = vpack.c.bf16 %v1012_v61, %v1012_v61 }
 0x249   : > { %907 = vmatprep.mubr.bf16.mxu0 %v739_v62  ;;  %1182 = vmatprep.mubr.bf16.mxu1 %v1014_v63 }
 0x24a   : > { %908 = vmatmul.mubr.bf16.vlgmr.msra.gmra.mxu0 %v738_v0  ;;  %1183 = vmatmul.mubr.bf16.vlgmr.msra.gmra.mxu1 %v1013_v3 }
 0x24b   : > { %1254 = vmatpush1.bf16.msra.mxu0 %v3924_v28  ;;  %1529 = vmatpush1.bf16.msra.mxu1 %v3924_v28 }
 0x24c   : > { %1255 = vmatprep.subr.bf16.mxu0 %v3929_v29  ;;  %1530 = vmatprep.subr.bf16.mxu1 %v3929_v29 }
 0x24d   : > { %1277 = vmatprep.mubr.bf16.mxu0 %v3768_v31  ;;  %1552 = vmatprep.mubr.bf16.mxu1 %v3768_v31 }
 0x24f   : > { %1256 = vmatpush1.bf16.msra.mxu0 %v3936_v30  ;;  %1531 = vmatpush1.bf16.msra.mxu1 %v3936_v30 }
 0x250   : > { %1257 = vmatprep.subr.bf16.mxu0 %v3949_v34  ;;  %1532 = vmatprep.subr.bf16.mxu1 %v3949_v34 }
 0x253   : > { %1258 = vmatpush1.bf16.msra.mxu0 %v3962_v37  ;;  %1533 = vmatpush1.bf16.msra.mxu1 %v3962_v37 }
 0x254   : > { %1259 = vmatprep.subr.bf16.mxu0 %v3968_v38  ;;  %1534 = vmatprep.subr.bf16.mxu1 %v3968_v38 }
 0x257   : > { %1260 = vmatpush1.bf16.msra.mxu0 %v3974_v39  ;;  %1535 = vmatpush1.bf16.msra.mxu1 %v3974_v39 }
 0x258   : > { %3317 = vmatprep.subr.bf16.mxu0 %v3577_v1  ;;  %3339 = vmatprep.subr.bf16.mxu1 %v3578_v2 }
 0x25a   : > { %3083 = vmatmul.mubr.msk.bf16.vlgmr.msra.gmra.mxu0 %vm502_vm1, %v3074_v4  ;;  %3111 = vmatmul.mubr.msk.bf16.vlgmr.msra.gmra.mxu1 %vm502_vm1, %v3102_v5 }
 0x25b   : > { %3318 = vmatpush3.bf16.msra.mxu0 %v3579_v6  ;;  %3340 = vmatpush3.bf16.msra.mxu1 %v3580_v7 }
 0x25c   : > { %3319 = vmatprep.subr.bf16.mxu0 %v3581_v8  ;;  %3341 = vmatprep.subr.bf16.mxu1 %v3582_v9 }
 0x25f   : > { %3320 = vmatpush3.bf16.msra.mxu0 %v3583_v10  ;;  %3342 = vmatpush3.bf16.msra.mxu1 %v3584_v11 }
 0x260   : > { %3321 = vmatprep.subr.bf16.mxu0 %v3585_v12  ;;  %3343 = vmatprep.subr.bf16.mxu1 %v3586_v13 }
 0x263   : > { %3322 = vmatpush3.bf16.msra.mxu0 %v3587_v14  ;;  %3344 = vmatpush3.bf16.msra.mxu1 %v3588_v15 }
 0x264   : > { %3323 = vmatprep.subr.bf16.mxu0 %v3589_v16  ;;  %3345 = vmatprep.subr.bf16.mxu1 %v3590_v17  ;;  %v3613_v17 = vld [vmem:[%s4585_s7 + $0x70] sm:$0xff]  }
 0x267   : > { %3324 = vmatpush3.bf16.msra.mxu0 %v3591_v18  ;;  %3346 = vmatpush3.bf16.msra.mxu1 %v3592_v19  ;;  %v3614_v18 = vld [vmem:[%s4585_s7 + $0x70] sm:$0xff]  }
 0x268   : > { %3325 = vmatprep.subr.bf16.mxu0 %v3593_v20  ;;  %3347 = vmatprep.subr.bf16.mxu1 %v3594_v21  ;;  %v3616_v19 = vld [vmem:[%s4585_s7 + $0x30] sm:$0xff]   ;;  %v3617_v20 = vld [vmem:[%s4585_s7 + $0x68] sm:$0xff]  }
 0x269   : > { %v3618_v21 = vld [vmem:[%s4585_s7 + $0x68] sm:$0xff]  }
 0x26b   : > { %3326 = vmatpush3.bf16.msra.mxu0 %v3595_v22  ;;  %3348 = vmatpush3.bf16.msra.mxu1 %v3596_v23  ;;  %v3619_v22 = vld [vmem:[%s4585_s7 + $0x28] sm:$0xff]  }
 0x26c   : > { %3327 = vmatprep.subr.bf16.mxu0 %v3597_v24  ;;  %3349 = vmatprep.subr.bf16.mxu1 %v3598_v25  ;;  %v3620_v23 = vld [vmem:[%s4585_s7 + $0x28] sm:$0xff]   ;;  %v3621_v24 = vld [vmem:[%s4585_s7 + $0x60] sm:$0xff]  }
 0x26d   : > { %v3622_v25 = vld [vmem:[%s4585_s7 + $0x60] sm:$0xff]  }
 0x26f   : > { %3328 = vmatpush3.bf16.msra.mxu0 %v3599_v26  ;;  %3350 = vmatpush3.bf16.msra.mxu1 %v3600_v32  ;;  %v3623_v26 = vld [vmem:[%s4585_s7 + $0x20] sm:$0xff]  }
 0x270   : > { %3329 = vmatprep.subr.bf16.mxu0 %v3601_v33  ;;  %3351 = vmatprep.subr.bf16.mxu1 %v3602_v35  ;;  %v3624_v32 = vld [vmem:[%s4585_s7 + $0x20] sm:$0xff]   ;;  %v3625_v33 = vld [vmem:[%s4585_s7 + $0x58] sm:$0xff]  }
 0x271   : > { %v3626_v35 = vld [vmem:[%s4585_s7 + $0x58] sm:$0xff]  }
 0x273   : > { %3330 = vmatpush3.bf16.msra.mxu0 %v3603_v36  ;;  %3352 = vmatpush3.bf16.msra.mxu1 %v3604_v40  ;;  %v3627_v36 = vld [vmem:[%s4585_s7 + $0x18] sm:$0xff]  }
 0x274   : > { %3331 = vmatprep.subr.bf16.mxu0 %v3605_v41  ;;  %3353 = vmatprep.subr.bf16.mxu1 %v3606_v42  ;;  %v3628_v40 = vld [vmem:[%s4585_s7 + $0x18] sm:$0xff]   ;;  %v3629_v41 = vld [vmem:[%s4585_s7 + $0x50] sm:$0xff]  }
 0x275   : > { %v3630_v42 = vld [vmem:[%s4585_s7 + $0x50] sm:$0xff]  }
 0x277   : > { %3332 = vmatpush3.bf16.msra.mxu0 %v3607_v43  ;;  %3354 = vmatpush3.bf16.msra.mxu1 %v3608_v44  ;;  %v3631_v43 = vld [vmem:[%s4585_s7 + $0x10] sm:$0xff]  }
 0x278   : > { %1803 = vmatprep.subr.bf16.mxu0 %v3919_v27  ;;  %2078 = vmatprep.subr.bf16.mxu1 %v3919_v27  ;;  %v3632_v44 = vld [vmem:[%s4585_s7 + $0x10] sm:$0xff]  }
 0x30a   : > { %v3289_v45 = vpop.f32.mrf.mxu0  ;;  %v3311_v46 = vpop.f32.mrf.mxu1 }
 0x30c   : > { %v3290_v48 = vpop.f32.mrf.mxu0  ;;  %v3312_v50 = vpop.f32.mrf.mxu1 }
 0x30d   : > { %v3291_v52 = vadd.f32 %v3290_v48, %v3289_v45  ;;  %v3313_v53 = vadd.f32 %v3312_v50, %v3311_v46  ;;  %v3633_v45 = vld [vmem:[%s4585_s7 + $0x48] sm:$0xff]  }
 0x30e   : > { %v3292_v54 = vpop.f32.mrf.mxu0  ;;  %v3314_v55 = vpop.f32.mrf.mxu1  ;;  %v3634_v46 = vld [vmem:[%s4585_s7 + $0x48] sm:$0xff]  }
 0x30f   : > { %v910_v56 = vadd.f32 %v3291_v52, %v4237_v47  ;;  %v1185_v27 = vadd.f32 %v3313_v53, %v4237_v47  ;;  %v3635_v48 = vld [vmem:[%s4585_s7 + $0x8] sm:$0xff]   ;;  %v3637_v52 = vld [vmem:[%s4585_s7 + $0x40] sm:$0xff]  }
 0x310   : > { %v3293_v57 = vpop.f32.mrf.mxu0  ;;  %v3315_v58 = vpop.f32.mrf.mxu1  ;;  %v3636_v50 = vld [vmem:[%s4585_s7 + $0x8] sm:$0xff]   ;;  %v3638_v53 = vld [vmem:[%s4585_s7 + $0x40] sm:$0xff]  }
 0x311   : > { %v915_v59 = vpack.c.bf16 %v910_v56, %v910_v56  ;;  %v1190_v60 = vpack.c.bf16 %v1185_v27, %v1185_v27  ;;  %v3639_v54 = vld [vmem:[%s4585_s7] sm:$0xff]   ;;  %v3643_v56 = vld [vmem:[%s4582_s4 + $0x34] ss:$8 sps:$4 sm:$0xff]  }
 0x312   : > { %v3640_v55 = vld [vmem:[%s4585_s7] sm:$0xff]  }
 0x313   : > { %917 = vst.msk [vmem:[%s4243_s21] sm:$0xf] %vm916_vm3, %v915_v59  ;;  %3073 = vst.msk [vmem:[%s4243_s21 + $0x4] sm:$0xf] %vm916_vm3, %v1190_v60 }
 0x31a   : > { %v1279_v61 = vpop.f32.mrf.mxu0  ;;  %v1554_v62 = vpop.f32.mrf.mxu1 }
 0x31b   : > { %v1280_v63 = vadd.f32 %v1279_v61, %v4105_v49  ;;  %v1555_v0 = vadd.f32 %v1554_v62, %v4105_v49 }
 0x31c   : > { %v1281_v3 = vpop.f32.mrf.mxu0  ;;  %v1556_v1 = vpop.f32.mrf.mxu1 }
 0x31d   : > { %v1282_v2 = vadd.f32 %v1281_v3, %v4107_v51  ;;  %v1557_v4 = vadd.f32 %v1556_v1, %v4107_v51  ;;  %v1286_v5 = vmax.f32 %v1280_v63, 0.0  ;;  %v1561_v6 = vmax.f32 %v1555_v0, 0.0 }
 0x31e   : > { %v1283_v7 = vpop.f32.mrf.mxu0  ;;  %v1558_v8 = vpop.f32.mrf.mxu1 }
 0x31f   : > { %v1287_v9 = vmax.f32 %v1282_v2, 0.0  ;;  %v1562_v10 = vmax.f32 %v1557_v4, 0.0  ;;  %v1288_v15 = vpack.c.bf16 %v1286_v5, %v1286_v5  ;;  %v1563_v16 = vpack.c.bf16 %v1561_v6, %v1561_v6 }
 0x320   : > { %v1284_v11 = vpop.f32.mrf.mxu0  ;;  %v1559_v12 = vpop.f32.mrf.mxu1 }
 0x321   : > { %v1289_v13 = vpack.c.bf16 %v1287_v9, %v1287_v9  ;;  %v1564_v14 = vpack.c.bf16 %v1562_v10, %v1562_v10 }
 0x323   : > { %1457 = vmatprep.mubr.bf16.mxu0 %v1289_v13  ;;  %1732 = vmatprep.mubr.bf16.mxu1 %v1564_v14 }
 0x324   : > { %1458 = vmatmul.mubr.bf16.vlgmr.msra.gmra.mxu0 %v1288_v15  ;;  %1733 = vmatmul.mubr.bf16.vlgmr.msra.gmra.mxu1 %v1563_v16 }
 0x325   : > { %1804 = vmatpush1.bf16.msra.mxu0 %v3924_v28  ;;  %2079 = vmatpush1.bf16.msra.mxu1 %v3924_v28  ;;  %v3609_v28 = vld [vmem:[%s4585_s7 + $0x78] sm:$0xff]  }
 0x326   : > { %1805 = vmatprep.subr.bf16.mxu0 %v3929_v29  ;;  %2080 = vmatprep.subr.bf16.mxu1 %v3929_v29  ;;  %v3610_v29 = vld [vmem:[%s4585_s7 + $0x78] sm:$0xff]  }
 0x327   : > { %1827 = vmatprep.mubr.bf16.mxu0 %v3768_v31  ;;  %2102 = vmatprep.mubr.bf16.mxu1 %v3768_v31 }
 0x329   : > { %1806 = vmatpush1.bf16.msra.mxu0 %v3936_v30  ;;  %2081 = vmatpush1.bf16.msra.mxu1 %v3936_v30  ;;  %v3130_v30 = vld [vmem:[%s3901_s28 + $0x10] sm:$0xf] }
 0x32a   : > { %1807 = vmatprep.subr.bf16.mxu0 %v3949_v34  ;;  %2082 = vmatprep.subr.bf16.mxu1 %v3949_v34  ;;  %v3158_v34 = vld [vmem:[%s3901_s28 + $0x14] sm:$0xf] }
 0x32d   : > { %1808 = vmatpush1.bf16.msra.mxu0 %v3962_v37  ;;  %2083 = vmatpush1.bf16.msra.mxu1 %v3962_v37  ;;  %v3611_v37 = vld [vmem:[%s4585_s7 + $0x38] sm:$0xff]  }
 0x32e   : > { %1809 = vmatprep.subr.bf16.mxu0 %v3968_v38  ;;  %2084 = vmatprep.subr.bf16.mxu1 %v3968_v38  ;;  %v3612_v38 = vld [vmem:[%s4585_s7 + $0x38] sm:$0xff]  }
 0x331   : > { %1810 = vmatpush1.bf16.msra.mxu0 %v3974_v39  ;;  %2085 = vmatpush1.bf16.msra.mxu1 %v3974_v39  ;;  %v3615_v39 = vld [vmem:[%s4585_s7 + $0x30] sm:$0xff]  }
 0x332   : > { %3361 = vmatprep.subr.bf16.mxu0 %v3609_v28  ;;  %3383 = vmatprep.subr.bf16.mxu1 %v3610_v29 }
 0x334   : > { %3139 = vmatmul.mubr.msk.bf16.vlgmr.msra.gmra.mxu0 %vm502_vm1, %v3130_v30  ;;  %3167 = vmatmul.mubr.msk.bf16.vlgmr.msra.gmra.mxu1 %vm502_vm1, %v3158_v34 }
 0x335   : > { %3362 = vmatpush3.bf16.msra.mxu0 %v3611_v37  ;;  %3384 = vmatpush3.bf16.msra.mxu1 %v3612_v38 }
 0x336   : > { %3363 = vmatprep.subr.bf16.mxu0 %v3613_v17  ;;  %3385 = vmatprep.subr.bf16.mxu1 %v3614_v18  ;;  %v3641_v18 = vld [vmem:[%s4582_s4 + $0x30] ss:$8 sps:$4 sm:$0xff]  }
 0x339   : > { %3364 = vmatpush3.bf16.msra.mxu0 %v3615_v39  ;;  %3386 = vmatpush3.bf16.msra.mxu1 %v3616_v19 }
 0x33a   : > { %3365 = vmatprep.subr.bf16.mxu0 %v3617_v20  ;;  %3387 = vmatprep.subr.bf16.mxu1 %v3618_v21  ;;  %v3646_v20 = vld [vmem:[%s4582_s4 + $0x24] ss:$8 sps:$4 sm:$0xff]   ;;  %v3644_v21 = vld [vmem:[%s4582_s4 + $0x20] ss:$8 sps:$4 sm:$0xff]  }
 0x33d   : > { %3366 = vmatpush3.bf16.msra.mxu0 %v3619_v22  ;;  %3388 = vmatpush3.bf16.msra.mxu1 %v3620_v23  ;;  %v3649_v22 = vld [vmem:[%s4582_s4 + $0x14] ss:$8 sps:$4 sm:$0xff]   ;;  %v3647_v23 = vld [vmem:[%s4582_s4 + $0x10] ss:$8 sps:$4 sm:$0xff]  }
 0x33e   : > { %3367 = vmatprep.subr.bf16.mxu0 %v3621_v24  ;;  %3389 = vmatprep.subr.bf16.mxu1 %v3622_v25  ;;  %v3652_v24 = vld [vmem:[%s4582_s4 + $0x4] ss:$8 sps:$4 sm:$0xff]   ;;  %v3650_v25 = vld [vmem:[%s4582_s4] ss:$8 sps:$4 sm:$0xff]  }
 0x341   : > { %3368 = vmatpush3.bf16.msra.mxu0 %v3623_v26  ;;  %3390 = vmatpush3.bf16.msra.mxu1 %v3624_v32  ;;  %v3654_v26 = vld [vmem:[%s4585_s7 + $0x78] sm:$0xff]  }
 0x342   : > { %3369 = vmatprep.subr.bf16.mxu0 %v3625_v33  ;;  %3391 = vmatprep.subr.bf16.mxu1 %v3626_v35  ;;  %v3186_v32 = vld [vmem:[%s3901_s28 + $0x18] sm:$0xf]  ;;  %v3214_v33 = vld [vmem:[%s3901_s28 + $0x1c] sm:$0xf]  ;;  %s2865_s28 = sshll.u32 %s4243_s21, 4  ;;  %s4525_s28 = int_to_ptr.vmem [resolvable:$true] %s2865_s28 }
 0x343   : > { %v3655_v35 = vld [vmem:[%s4585_s7 + $0x38] sm:$0xff]   ;;  %s3687_s24 = scalar_lea.vmem %s4525_s28, 512  ;;  %p3694_p1 = scmp.lt.s32.totalorder %s4525_s28, %s3692_s29 }
 0x344   : > { %p3688_p12 = scmp.ne.s32.totalorder %s4525_s28, %s3687_s24  ;;  %p3695_p2 = scmp.lt.s32.totalorder %s3693_s30, %s3687_s24 }
 0x345   : > { %3370 = vmatpush3.bf16.msra.mxu0 %v3627_v36  ;;  %3392 = vmatpush3.bf16.msra.mxu1 %v3628_v40  ;;  %v3656_v36 = vld [vmem:[%s4585_s7 + $0x38] sm:$0xff]   ;;  %v3657_v40 = vld [vmem:[%s4585_s7 + $0x70] sm:$0xff]  }
 0x346   : > { %3371 = vmatprep.subr.bf16.mxu0 %v3629_v41  ;;  %3393 = vmatprep.subr.bf16.mxu1 %v3630_v42  ;;  %v3658_v41 = vld [vmem:[%s4585_s7 + $0x70] sm:$0xff]   ;;  %p3689_p13 = pnand %p3688_p12, %p3868_p4  ;;  %p3696_p3 = por %p3695_p2, %p3694_p1 }
 0x347   : > { %v3659_v42 = vld [vmem:[%s4585_s7 + $0x30] sm:$0xff]  }
 0x348   : > { %p3690_p0 = pneg %p3689_p13 }
 0x349   : > { %3372 = vmatpush3.bf16.msra.mxu0 %v3631_v43  ;;  %3394 = vmatpush3.bf16.msra.mxu1 %v3632_v44  ;;  %v3660_v43 = vld [vmem:[%s4585_s7 + $0x30] sm:$0xff]   ;;  %v3661_v44 = vld [vmem:[%s4585_s7 + $0x68] sm:$0xff]  }
 0x34a   : > { %3373 = vmatprep.subr.bf16.mxu0 %v3633_v45  ;;  %3395 = vmatprep.subr.bf16.mxu1 %v3634_v46  ;;  %v3662_v45 = vld [vmem:[%s4585_s7 + $0x68] sm:$0xff]   ;;  %p3697_p5 = pnand %p3696_p3, %p3690_p0 }
 0x34b   : > { %v3663_v46 = vld [vmem:[%s4585_s7 + $0x28] sm:$0xff]  }
 0x34d   : > { %3374 = vmatpush3.bf16.msra.mxu0 %v3635_v48  ;;  %3396 = vmatpush3.bf16.msra.mxu1 %v3636_v50  ;;  %v3664_v48 = vld [vmem:[%s4585_s7 + $0x28] sm:$0xff]   ;;  %v3665_v50 = vld [vmem:[%s4585_s7 + $0x60] sm:$0xff]  }
 0x34e   : > { %3375 = vmatprep.subr.bf16.mxu0 %v3637_v52  ;;  %3397 = vmatprep.subr.bf16.mxu1 %v3638_v53  ;;  %v3666_v52 = vld [vmem:[%s4585_s7 + $0x60] sm:$0xff]  }
 0x34f   : > { %v3667_v53 = vld [vmem:[%s4585_s7 + $0x20] sm:$0xff]  }
 0x351   : > { %3376 = vmatpush3.bf16.msra.mxu0 %v3639_v54  ;;  %3398 = vmatpush3.bf16.msra.mxu1 %v3640_v55  ;;  %v3668_v54 = vld [vmem:[%s4585_s7 + $0x20] sm:$0xff]   ;;  %v3669_v55 = vld [vmem:[%s4585_s7 + $0x58] sm:$0xff]  }
 0x352   : > { %2353 = vmatprep.subr.bf16.mxu0 %v3643_v56  ;;  %2628 = vmatprep.subr.bf16.mxu1 %v3643_v56  ;;  %v3670_v56 = vld [vmem:[%s4585_s7 + $0x58] sm:$0xff]  }
 0x3e4   : > { %v3333_v27 = vpop.f32.mrf.mxu0  ;;  %v3355_v57 = vpop.f32.mrf.mxu1 }
 0x3e6   : > { %v3334_v58 = vpop.f32.mrf.mxu0  ;;  %v3356_v59 = vpop.f32.mrf.mxu1 }
 0x3e7   : > { %v3335_v60 = vadd.f32 %v3334_v58, %v3333_v27  ;;  %v3357_v61 = vadd.f32 %v3356_v59, %v3355_v57  ;;  %v3671_v27 = vld [vmem:[%s4585_s7 + $0x18] sm:$0xff]   ;;  %v3673_v58 = vld [vmem:[%s4585_s7 + $0x50] sm:$0xff]  }
 0x3e8   : > { %v3336_v62 = vpop.f32.mrf.mxu0  ;;  %v3358_v63 = vpop.f32.mrf.mxu1  ;;  %v3672_v57 = vld [vmem:[%s4585_s7 + $0x18] sm:$0xff]   ;;  %v3674_v59 = vld [vmem:[%s4585_s7 + $0x50] sm:$0xff]  }
 0x3e9   : > { %v1460_v0 = vadd.f32 %v3335_v60, %v4237_v47  ;;  %v1735_v3 = vadd.f32 %v3357_v61, %v4237_v47  ;;  %v3675_v60 = vld [vmem:[%s4585_s7 + $0x10] sm:$0xff]   ;;  %v3677_v62 = vld [vmem:[%s4585_s7 + $0x48] sm:$0xff]  }
 0x3ea   : > { %v3337_v1 = vpop.f32.mrf.mxu0  ;;  %v3359_v2 = vpop.f32.mrf.mxu1  ;;  %v3676_v61 = vld [vmem:[%s4585_s7 + $0x10] sm:$0xff]   ;;  %v3678_v63 = vld [vmem:[%s4585_s7 + $0x48] sm:$0xff]  }
 0x3eb   : > { %v1465_v4 = vpack.c.bf16 %v1460_v0, %v1460_v0  ;;  %v1740_v5 = vpack.c.bf16 %v1735_v3, %v1735_v3  ;;  %v3679_v0 = vld [vmem:[%s4585_s7 + $0x8] sm:$0xff]   ;;  %v3681_v1 = vld [vmem:[%s4585_s7 + $0x40] sm:$0xff]  }
 0x3ec   : > { %v3680_v3 = vld [vmem:[%s4585_s7 + $0x8] sm:$0xff]   ;;  %v3682_v2 = vld [vmem:[%s4585_s7 + $0x40] sm:$0xff]  }
 0x3ed   : > { %3101 = vst.msk [vmem:[%s4243_s21 + $0x8] sm:$0xf] %vm916_vm3, %v1465_v4  ;;  %3129 = vst.msk [vmem:[%s4243_s21 + $0xc] sm:$0xf] %vm916_vm3, %v1740_v5  ;;  %v3683_v4 = vld [vmem:[%s4585_s7] sm:$0xff]  }
 0x3ee   : > { %v3684_v5 = vld [vmem:[%s4585_s7] sm:$0xff]  }
 0x3f4   : > { %v1829_v6 = vpop.f32.mrf.mxu0  ;;  %v2104_v7 = vpop.f32.mrf.mxu1 }
 0x3f5   : > { %v1830_v8 = vadd.f32 %v1829_v6, %v4105_v49  ;;  %v2105_v9 = vadd.f32 %v2104_v7, %v4105_v49 }
 0x3f6   : > { %v1831_v10 = vpop.f32.mrf.mxu0  ;;  %v2106_v11 = vpop.f32.mrf.mxu1 }
 0x3f7   : > { %v1832_v12 = vadd.f32 %v1831_v10, %v4107_v51  ;;  %v2107_v13 = vadd.f32 %v2106_v11, %v4107_v51  ;;  %v1836_v14 = vmax.f32 %v1830_v8, 0.0  ;;  %v2111_v15 = vmax.f32 %v2105_v9, 0.0 }
 0x3f8   : > { %v1833_v16 = vpop.f32.mrf.mxu0  ;;  %v2108_v28 = vpop.f32.mrf.mxu1 }
 0x3f9   : > { %v1837_v29 = vmax.f32 %v1832_v12, 0.0  ;;  %v2112_v30 = vmax.f32 %v2107_v13, 0.0  ;;  %v1838_v39 = vpack.c.bf16 %v1836_v14, %v1836_v14  ;;  %v2113_v19 = vpack.c.bf16 %v2111_v15, %v2111_v15 }
 0x3fa   : > { %v1834_v34 = vpop.f32.mrf.mxu0  ;;  %v2109_v37 = vpop.f32.mrf.mxu1 }
 0x3fb   : > { %v1839_v38 = vpack.c.bf16 %v1837_v29, %v1837_v29  ;;  %v2114_v17 = vpack.c.bf16 %v2112_v30, %v2112_v30 }
 0x3fd   : > { %2007 = vmatprep.mubr.bf16.mxu0 %v1839_v38  ;;  %2282 = vmatprep.mubr.bf16.mxu1 %v2114_v17 }
 0x3fe   : > { %2008 = vmatmul.mubr.bf16.vlgmr.msra.gmra.mxu0 %v1838_v39  ;;  %2283 = vmatmul.mubr.bf16.vlgmr.msra.gmra.mxu1 %v2113_v19 }
 0x3ff   : > { %2354 = vmatpush1.bf16.msra.mxu0 %v3641_v18  ;;  %2629 = vmatpush1.bf16.msra.mxu1 %v3641_v18 }
 0x400   : > { %2355 = vmatprep.subr.bf16.mxu0 %v3646_v20  ;;  %2630 = vmatprep.subr.bf16.mxu1 %v3646_v20 }
 0x401   : > { %2377 = vmatprep.mubr.bf16.mxu0 %v3768_v31  ;;  %2652 = vmatprep.mubr.bf16.mxu1 %v3768_v31  ;;  %v3653_v31 = vld [vmem:[%s4585_s7 + $0x78] sm:$0xff]  }
 0x403   : > { %2356 = vmatpush1.bf16.msra.mxu0 %v3644_v21  ;;  %2631 = vmatpush1.bf16.msra.mxu1 %v3644_v21 }
 0x404   : > { %2357 = vmatprep.subr.bf16.mxu0 %v3649_v22  ;;  %2632 = vmatprep.subr.bf16.mxu1 %v3649_v22 }
 0x407   : > { %2358 = vmatpush1.bf16.msra.mxu0 %v3647_v23  ;;  %2633 = vmatpush1.bf16.msra.mxu1 %v3647_v23 }
 0x408   : > { %2359 = vmatprep.subr.bf16.mxu0 %v3652_v24  ;;  %2634 = vmatprep.subr.bf16.mxu1 %v3652_v24 }
 0x40b   : > { %2360 = vmatpush1.bf16.msra.mxu0 %v3650_v25  ;;  %2635 = vmatpush1.bf16.msra.mxu1 %v3650_v25 }
 0x40c   : > { %3405 = vmatprep.subr.bf16.mxu0 %v3653_v31  ;;  %3427 = vmatprep.subr.bf16.mxu1 %v3654_v26 }
 0x40e   : > { %3195 = vmatmul.mubr.msk.bf16.vlgmr.msra.gmra.mxu0 %vm502_vm1, %v3186_v32  ;;  %3223 = vmatmul.mubr.msk.bf16.vlgmr.msra.gmra.mxu1 %vm502_vm1, %v3214_v33 }
 0x40f   : > { %3406 = vmatpush3.bf16.msra.mxu0 %v3655_v35  ;;  %3428 = vmatpush3.bf16.msra.mxu1 %v3656_v36 }
 0x410   : > { %3407 = vmatprep.subr.bf16.mxu0 %v3657_v40  ;;  %3429 = vmatprep.subr.bf16.mxu1 %v3658_v41  ;;  %v3196_v40 = vld [vmem:[%s4586_s8] ss:$0 sm:$0xff] }
 0x413   : > { %3408 = vmatpush3.bf16.msra.mxu0 %v3659_v42  ;;  %3430 = vmatpush3.bf16.msra.mxu1 %v3660_v43 }
 0x414   : > { %3409 = vmatprep.subr.bf16.mxu0 %v3661_v44  ;;  %3431 = vmatprep.subr.bf16.mxu1 %v3662_v45 }
 0x417   : > { %3410 = vmatpush3.bf16.msra.mxu0 %v3663_v46  ;;  %3432 = vmatpush3.bf16.msra.mxu1 %v3664_v48 }
 0x418   : > { %3411 = vmatprep.subr.bf16.mxu0 %v3665_v50  ;;  %3433 = vmatprep.subr.bf16.mxu1 %v3666_v52 }
 0x41b   : > { %3412 = vmatpush3.bf16.msra.mxu0 %v3667_v53  ;;  %3434 = vmatpush3.bf16.msra.mxu1 %v3668_v54 }
 0x41c   : > { %3413 = vmatprep.subr.bf16.mxu0 %v3669_v55  ;;  %3435 = vmatprep.subr.bf16.mxu1 %v3670_v56 }
 0x41f   : > { %3414 = vmatpush3.bf16.msra.mxu0 %v3671_v27  ;;  %3436 = vmatpush3.bf16.msra.mxu1 %v3672_v57 }
 0x420   : > { %3415 = vmatprep.subr.bf16.mxu0 %v3673_v58  ;;  %3437 = vmatprep.subr.bf16.mxu1 %v3674_v59 }
 0x423   : > { %3416 = vmatpush3.bf16.msra.mxu0 %v3675_v60  ;;  %3438 = vmatpush3.bf16.msra.mxu1 %v3676_v61 }
 0x424   : > { %3417 = vmatprep.subr.bf16.mxu0 %v3677_v62  ;;  %3439 = vmatprep.subr.bf16.mxu1 %v3678_v63 }
 0x427   : > { %3418 = vmatpush3.bf16.msra.mxu0 %v3679_v0  ;;  %3440 = vmatpush3.bf16.msra.mxu1 %v3680_v3 }
 0x428   : > { %3419 = vmatprep.subr.bf16.mxu0 %v3681_v1  ;;  %3441 = vmatprep.subr.bf16.mxu1 %v3682_v2 }
 0x42b   : > { %3420 = vmatpush3.bf16.msra.mxu0 %v3683_v4  ;;  %3442 = vmatpush3.bf16.msra.mxu1 %v3684_v5 }
 0x4be   : > { %v3377_v6 = vpop.f32.mrf.mxu0  ;;  %v3399_v7 = vpop.f32.mrf.mxu1 }
 0x4c0   : > { %v3378_v8 = vpop.f32.mrf.mxu0  ;;  %v3400_v9 = vpop.f32.mrf.mxu1 }
 0x4c1   : > { %v3379_v10 = vadd.f32 %v3378_v8, %v3377_v6  ;;  %v3401_v11 = vadd.f32 %v3400_v9, %v3399_v7 }
 0x4c2   : > { %v3380_v12 = vpop.f32.mrf.mxu0  ;;  %v3402_v13 = vpop.f32.mrf.mxu1 }
 0x4c3   : > { %v2010_v14 = vadd.f32 %v3379_v10, %v4237_v47  ;;  %v2285_v15 = vadd.f32 %v3401_v11, %v4237_v47 }
 0x4c4   : > { %v3381_v16 = vpop.f32.mrf.mxu0  ;;  %v3403_v28 = vpop.f32.mrf.mxu1 }
 0x4c5   : > { %v2015_v29 = vpack.c.bf16 %v2010_v14, %v2010_v14  ;;  %v2290_v30 = vpack.c.bf16 %v2285_v15, %v2285_v15 }
 0x4c7   : > { %3157 = vst.msk [vmem:[%s4243_s21 + $0x10] sm:$0xf] %vm916_vm3, %v2015_v29  ;;  %3185 = vst.msk [vmem:[%s4243_s21 + $0x14] sm:$0xf] %vm916_vm3, %v2290_v30 }
 0x4ce   : > { %v2379_v34 = vpop.f32.mrf.mxu0  ;;  %v2654_v37 = vpop.f32.mrf.mxu1 }
 0x4cf   : > { %v2380_v38 = vadd.f32 %v2379_v34, %v4105_v49  ;;  %v2655_v17 = vadd.f32 %v2654_v37, %v4105_v49 }
 0x4d0   : > { %v2381_v18 = vpop.f32.mrf.mxu0  ;;  %v2656_v39 = vpop.f32.mrf.mxu1 }
 0x4d1   : > { %v2382_v19 = vadd.f32 %v2381_v18, %v4107_v51  ;;  %v2657_v47 = vadd.f32 %v2656_v39, %v4107_v51  ;;  %v2386_v20 = vmax.f32 %v2380_v38, 0.0  ;;  %v2661_v21 = vmax.f32 %v2655_v17, 0.0 }
 0x4d2   : > { %v2383_v22 = vpop.f32.mrf.mxu0  ;;  %v2658_v23 = vpop.f32.mrf.mxu1 }
 0x4d3   : > { %v2387_v24 = vmax.f32 %v2382_v19, 0.0  ;;  %v2662_v25 = vmax.f32 %v2657_v47, 0.0  ;;  %v2388_v35 = vpack.c.bf16 %v2386_v20, %v2386_v20  ;;  %v2663_v49 = vpack.c.bf16 %v2661_v21, %v2661_v21 }
 0x4d4   : > { %v2384_v31 = vpop.f32.mrf.mxu0  ;;  %v2659_v26 = vpop.f32.mrf.mxu1 }
 0x4d5   : > { %v2389_v32 = vpack.c.bf16 %v2387_v24, %v2387_v24  ;;  %v2664_v33 = vpack.c.bf16 %v2662_v25, %v2662_v25 }
 0x4d7   : > { %2557 = vmatprep.mubr.bf16.mxu0 %v2389_v32  ;;  %2832 = vmatprep.mubr.bf16.mxu1 %v2664_v33 }
 0x4d8   : > { %2558 = vmatmul.mubr.bf16.vlgmr.msra.gmra.mxu0 %v2388_v35  ;;  %2833 = vmatmul.mubr.bf16.vlgmr.msra.gmra.mxu1 %v2663_v49 }
 0x598   : > { %v3421_v36 = vpop.f32.mrf.mxu0  ;;  %v3443_v51 = vpop.f32.mrf.mxu1 }
 0x59a   : > { %v3422_v41 = vpop.f32.mrf.mxu0  ;;  %v3444_v42 = vpop.f32.mrf.mxu1 }
 0x59b   : > { %v3423_v43 = vadd.f32 %v3422_v41, %v3421_v36  ;;  %v3445_v44 = vadd.f32 %v3444_v42, %v3443_v51 }
 0x59c   : > { %v3424_v45 = vpop.f32.mrf.mxu0  ;;  %v3446_v46 = vpop.f32.mrf.mxu1 }
 0x59d   : > { %v2560_v48 = vadd.f32 %v3423_v43, %v3196_v40  ;;  %v2835_v50 = vadd.f32 %v3445_v44, %v3196_v40 }
 0x59e   : > { %v3425_v52 = vpop.f32.mrf.mxu0  ;;  %v3447_v53 = vpop.f32.mrf.mxu1 }
 0x59f   : > { %v2565_v54 = vpack.c.bf16 %v2560_v48, %v2560_v48  ;;  %v2840_v55 = vpack.c.bf16 %v2835_v50, %v2835_v50 }
 0x5a1   : > { %3213 = vst.msk [vmem:[%s4243_s21 + $0x18] sm:$0xf] %vm916_vm3, %v2565_v54  ;;  %3241 = vst.msk [vmem:[%s4243_s21 + $0x1c] sm:$0xf] %vm916_vm3, %v2840_v55 }
 0x5a2   : > { %3700 = shalt.err (!%p3697_p5)
}
 0x5a3   : > { %s3701_s21 = scalar_lea.hbm %s4523_s20, 512  ;;  %s3705_s11 = scalar_lea.hbm %s4587_s9, 1024 }
 0x5a4   : > { %p3702_p6 = scmp.ne.s32.totalorder %s4523_s20, %s3701_s21  ;;  %p3706_p10 = scmp.lt.s32.totalorder %s4523_s20, %s4587_s9 }
 0x5a5   : > { %p3707_p11 = scmp.lt.s32.totalorder %s3705_s11, %s3701_s21 }
 0x5a6   : > { %p3703_p7 = pnand %p3702_p6, %p3868_p4 }
 0x5a7   : > { %p3708_p12 = por %p3707_p11, %p3706_p10 }
 0x5a8   : > { %p3704_p9 = pneg %p3703_p7 }
 0x5aa   : > { %p3709_p13 = pnand %p3708_p12, %p3704_p9 }
 0x5ac   : > { %3712 = shalt.err (!%p3709_p13)
}
 0x5ad   : > { %s3771_s24 = smov 64   ;;  %s3772_s27 = smov 4  }
 0x5ae   : > { %3461 = dma.vmem_to_hbm [thread:$0]  (%p3868_p4), %s4525_s28, 512, %s4523_s20, %s4533_s22, %s3771_s24, %s3771_s24, %s3772_s27  }
 0x5af PF: > { %p3467_p0 = scmp.ge.s32.totalorder %s3763_s18, 2  ;;  %s2883_s29 = sand.u32 1, %s3743_s13  }
 0x5b0   : > { %s2884_s30 = scalar_lea.sflag [#allocation3], %s2883_s29 }
 0x5b1   : > { %p3464_p1 = pnand %p3467_p0, %p3875_p8 }
 0x5b3   : > { %p3465_p2 = pneg %p3464_p1 }
 0x5b5   : > { %3738 = dma.done.wait (%p3465_p2), %s2884_s30, 512  }
 0x5b6   : > { %3740 = vsyncadd (%p3465_p2), %s2884_s30, 4294966784  ;;  %s24_s18 = sadd.s32 1, %s3763_s18   ;;  %s4597_s23 = sld [smem:[#allocation5_spill]] }
 0x5b7   : > { %p21_p3 = scmp.ge.s32.totalorder %s24_s18, 4   ;;  %s4598_s13 = smov %s3747_s14 }
 0x5b8   : > { %s4599_s14 = smov %s3751_s15  ;;  %s4600_s15 = smov %s3881_s26 }
 0x5b9   : > { %s4601_s16 = smov %s3759_s17  ;;  %23 = sbr.rel (!%p21_p3) target bundleno = 6 (0x6), region = 120 }
 0x5bc   : > { %s4602_s17 = smov %s4597_s23 }
 0x5be   :  { %2899 = vsyncpa [#allocation3], 1 }
 0x5bf   :  { %2901 = vsyncpa [#allocation3 + $0x1], 1 }

</bundles_post_ra>
